<compile_context>
chip_gen: v5e
topology: v5e:2x2
jax: 0.10.0
libtpu: 0.0.40
codegen_flags: <defaults>
</compile_context>

<pallas_src>
import functools

import jax
import jax.numpy as jnp
from jax import lax
from jax.experimental import pallas as pl
from jax.experimental.pallas import tpu as pltpu


def _spat_attn_kernel(x_ref, m_ref, kbias_ref, wv_ref, bv_ref,
                      bn_scale_ref, bn_shift_ref, o_ref, v_sc,
                      *, compute_dtype, exp_dtype, tkv, n_kv, hw_true):
    """Grid = (batch, query-block). The kv axis lives entirely in-kernel: the full
    (C, HW_pad) x slab of the current batch is VMEM-resident and V is projected once
    per batch into v_sc."""
    qi = pl.program_id(1)
    C, hw_pad = x_ref.shape[1], x_ref.shape[2]
    tq = o_ref.shape[2]

    # ---- once per batch: value projection for the whole resident slab ----
    @pl.when(qi == 0)
    def _project_values():
        x_all = x_ref[0]                                            # (C, HWp) compute dtype
        v = lax.dot_general(wv_ref[...], x_all,                     # (C, HWp) f32
                            dimension_numbers=(((0,), (0,)), ((), ())),
                            preferred_element_type=jnp.float32)
        v_sc[...] = (v + bv_ref[...]).astype(v_sc.dtype)            # gamma folded into Wv/bv

    # ---- per query block: fused Q*K projection, channel-major (C, TQ) ----
    q_off = pl.multiple_of(qi * tq, tq)
    xq = x_ref[0, :, pl.ds(q_off, tq)]                              # (C, TQ)
    qm = lax.dot_general(m_ref[...], xq,                            # (C, TQ) f32
                         dimension_numbers=(((0,), (0,)), ((), ())),
                         preferred_element_type=jnp.float32)
    # kbias folds the (bq Wk^T)·x_j energy term; i-only terms are softmax-invariant.
    qm = (qm + kbias_ref[...]).astype(compute_dtype)

    def scores(off, width):
        """s[j, i] = energy(query i, key off+j): keys on sublanes, queries on lanes."""
        xk = x_ref[0, :, pl.ds(off, width)]                         # (C, width)
        s = lax.dot_general(xk, qm,                                 # (width, TQ) f32
                            dimension_numbers=(((0,), (0,)), ((), ())),
                            preferred_element_type=jnp.float32)
        if hw_pad != hw_true:                                       # mask padded keys
            jpos = off + lax.broadcasted_iota(jnp.int32, s.shape, 0)
            s = jnp.where(jpos < hw_true, s, jnp.float32(-jnp.inf))
        return s

    if n_kv == 1:
        # Single kv chunk: plain row softmax -- no online-softmax machinery.
        s = scores(0, hw_pad)                                       # (HWp, TQ)
        m_row = jnp.max(s, axis=0, keepdims=True)                   # (1, TQ)
        p = jnp.exp((s - m_row).astype(exp_dtype))
        l_row = jnp.sum(p, axis=0, keepdims=True, dtype=jnp.float32)
        acc = jnp.dot(v_sc[...], p.astype(compute_dtype),           # (C, TQ) f32
                      preferred_element_type=jnp.float32)
    else:
        # Online softmax over kv chunks of the resident slab (flash-style carry).
        def body(c, carry):
            m_prev, l_prev, acc_prev = carry
            off = pl.multiple_of(c * tkv, tkv)
            s = scores(off, tkv)                                    # (TKV, TQ)
            m_new = jnp.maximum(m_prev, jnp.max(s, axis=0, keepdims=True))
            alpha = jnp.exp(m_prev - m_new)                         # (1, TQ)
            p = jnp.exp((s - m_new).astype(exp_dtype))
            l_new = alpha * l_prev + jnp.sum(p, axis=0, keepdims=True, dtype=jnp.float32)
            v_chunk = v_sc[:, pl.ds(off, tkv)]                      # (C, TKV)
            acc_new = alpha * acc_prev + jnp.dot(
                v_chunk, p.astype(compute_dtype), preferred_element_type=jnp.float32)
            return m_new, l_new, acc_new

        init = (jnp.full((1, tq), -jnp.inf, jnp.float32),
                jnp.zeros((1, tq), jnp.float32),
                jnp.zeros((C, tq), jnp.float32))
        _, l_row, acc = lax.fori_loop(0, n_kv, body, init, unroll=n_kv <= 8)

    # ---- epilogue: normalize, ReLU, folded inference BatchNorm; lane-dense store ----
    inv_l = pl.reciprocal(l_row, approx=True)                       # (1, TQ), EUP slot
    out = jnp.maximum(acc * inv_l, 0.0)
    out = out * bn_scale_ref[...] + bn_shift_ref[...]
    o_ref[0] = out.astype(o_ref.dtype)


def _round_up(n, m):
    return -(-n // m) * m


def _pick_tq(hw_pad):
    for cand in (512, 256, 128):
        if hw_pad % cand == 0:
            return cand
    return hw_pad            # unreachable: hw_pad is a multiple of 128


def _pick_tkv(hw_pad):
    # Large kv chunks keep the per-chunk matmuls long; the slab is VMEM-resident anyway,
    # so the chunk size only bounds the transient (TKV, TQ) score tile.
    if hw_pad <= 2048:
        return hw_pad
    for cand in (2048, 1024, 512, 256, 128):
        if hw_pad % cand == 0:
            return cand
    return hw_pad            # unreachable


def _vmem_bytes_estimate(C, hw_pad, tq, tkv, compute_dtype):
    ce = jnp.dtype(compute_dtype).itemsize
    est = 2 * C * hw_pad * ce                    # resident x slab (double-buffered input)
    est += C * hw_pad * ce                       # V scratch slab
    est += 2 * C * tq * 4                        # output block (double-buffered, f32)
    est += 2 * (2 * C * C * ce + 4 * C * 4)      # small parameter blocks
    est += 3 * tkv * tq * 4                      # score / prob transients
    est += 6 * C * tq * 4                        # qm / acc / epilogue temporaries
    return est


def spat_attn(x_nchw, wq, bq, wk, bk, wv, bv, gamma, bn_scale, bn_shift, *,
              compute_dtype=jnp.bfloat16, exp_dtype=jnp.float32,
              tq=None, tkv=None):
    """x_nchw: (B, C, H, W) f32.  1x1-conv weights are (C_in, C_out); biases (1, C_out).
    exp_dtype=jnp.bfloat16 roughly doubles EUP exp throughput on v6e/v7x (keep f32 on v5e).
    bk only shifts energies by a query-constant (softmax-invariant), so it never enters
    the kernel."""
    del bk
    B, C, H, W = x_nchw.shape
    HW = H * W
    hw_pad = _round_up(HW, 128)

    # Channels-first flatten is a free reshape; pad HW up to a lane multiple (padded keys
    # are masked in-kernel, padded query rows are sliced off below).
    x_chw = x_nchw.reshape(B, C, HW)
    if hw_pad != HW:
        x_chw = jnp.pad(x_chw, ((0, 0), (0, 0), (0, hw_pad - HW)))
    # Stream x in the compute dtype (bf16 by default): halves HBM bytes per batch.
    x_chw = x_chw.astype(compute_dtype)

    tq = _pick_tq(hw_pad) if tq is None else tq
    tkv = _pick_tkv(hw_pad) if tkv is None else tkv
    assert hw_pad % tq == 0 and hw_pad % tkv == 0, "tiles must divide padded HW"
    nq = hw_pad // tq
    n_kv = hw_pad // tkv

    # Fuse Q/K projections into a single CxC matrix + per-channel key bias; fold gamma
    # into the value projection (linear, before ReLU -> sign-safe).
    m_fused = (wq @ wk.T).astype(compute_dtype)                     # (C, C)
    kbias_col = (bq @ wk.T).reshape(C, 1).astype(jnp.float32)       # (C, 1)
    g = gamma.reshape(())
    wv_g = (g * wv).astype(compute_dtype)                           # (C, C)
    bv_col = (g * bv).reshape(C, 1).astype(jnp.float32)             # (C, 1)
    bn_scale_col = bn_scale.reshape(C, 1).astype(jnp.float32)
    bn_shift_col = bn_shift.reshape(C, 1).astype(jnp.float32)

    kernel = functools.partial(_spat_attn_kernel, compute_dtype=compute_dtype,
                               exp_dtype=exp_dtype, tkv=tkv, n_kv=n_kv, hw_true=HW)

    vmem_limit = int(min(max(2 * _vmem_bytes_estimate(C, hw_pad, tq, tkv, compute_dtype),
                             16 * 1024 * 1024), 64 * 1024 * 1024))

    out_chw = pl.pallas_call(
        kernel,
        out_shape=jax.ShapeDtypeStruct((B, C, hw_pad), jnp.float32),
        grid_spec=pltpu.PrefetchScalarGridSpec(
            num_scalar_prefetch=0,
            grid=(B, nq),
            in_specs=[
                # Whole (C, HWp) slab per batch; block index ignores qi, so Pallas only
                # re-DMAs when the batch changes (query tiles are sliced from the slab).
                pl.BlockSpec((1, C, hw_pad), lambda b, qi: (b, 0, 0)),
                pl.BlockSpec((C, C), lambda b, qi: (0, 0)),         # M = Wq Wk^T
                pl.BlockSpec((C, 1), lambda b, qi: (0, 0)),         # kbias = (bq Wk^T)^T
                pl.BlockSpec((C, C), lambda b, qi: (0, 0)),         # gamma * Wv
                pl.BlockSpec((C, 1), lambda b, qi: (0, 0)),         # gamma * bv
                pl.BlockSpec((C, 1), lambda b, qi: (0, 0)),         # BN scale
                pl.BlockSpec((C, 1), lambda b, qi: (0, 0)),         # BN shift
            ],
            out_specs=pl.BlockSpec((1, C, tq), lambda b, qi: (b, 0, qi)),
            scratch_shapes=[
                pltpu.VMEM((C, hw_pad), compute_dtype),             # V slab (per batch)
            ],
        ),
        compiler_params=pltpu.CompilerParams(
            # Batch shards across TensorCores; the query axis must stay sequential so the
            # per-batch V-slab init (pl.when(qi == 0)) is executed by the owning core.
            # TODO(synk): for B == 1 on v7x this leaves one core idle; a per-core V init
            # would be needed to also mark the query axis "parallel".
            dimension_semantics=("parallel", "arbitrary"),
            vmem_limit_bytes=vmem_limit,
        ),
    )(x_chw, m_fused, kbias_col, wv_g, bv_col, bn_scale_col, bn_shift_col)

    return out_chw[:, :, :HW].reshape(B, C, H, W)


def spat_attn_reference(x_nchw, wq, bq, wk, bk, wv, bv, gamma, bn_scale, bn_shift):
    """Plain-JAX reference mirroring the PyTorch forward (inference-mode BN)."""
    B, C, H, W = x_nchw.shape
    HW = H * W
    xf = x_nchw.reshape(B, C, HW).transpose(0, 2, 1)                # (B, HW, C)
    q = xf @ wq + bq
    k = xf @ wk + bk
    v = xf @ wv + bv
    energy = jnp.einsum('bic,bjc->bij', q, k)
    attn = jax.nn.softmax(energy, axis=-1)
    out = jnp.einsum('bij,bjc->bic', attn, v)
    out = gamma.reshape(()) * out
    out = jnp.maximum(out, 0.0)
    out = out * bn_scale + bn_shift
    return out.transpose(0, 2, 1).reshape(B, C, H, W)


if __name__ == "__main__":
    B, C, H, W = 2, 16, 16, 16          # HW = 256
    ratio = 8
    Cq = C // ratio
    eps = 1e-5

    key = jax.random.PRNGKey(0)
    ks = jax.random.split(key, 13)

    x = jax.random.normal(ks[0], (B, C, H, W), dtype=jnp.float32)

    # Conv2d 1x1 weights stored as (C_in, C_out) so that y = x @ W + b.
    wq = 0.2 * jax.random.normal(ks[1], (C, Cq), dtype=jnp.float32)
    bq = 0.1 * jax.random.normal(ks[2], (1, Cq), dtype=jnp.float32)
    wk = 0.2 * jax.random.normal(ks[3], (C, Cq), dtype=jnp.float32)
    bk = 0.1 * jax.random.normal(ks[4], (1, Cq), dtype=jnp.float32)
    wv = 0.2 * jax.random.normal(ks[5], (C, C), dtype=jnp.float32)
    bv = 0.1 * jax.random.normal(ks[6], (1, C), dtype=jnp.float32)

    # PyTorch initializes gamma to 0 (output == BN bias); use a nonzero scalar so the
    # attention path is actually exercised.
    gamma = jnp.full((1,), 0.5, dtype=jnp.float32)

    # BatchNorm2d(in_dim) inference mode: fold (weight, bias, running stats) into scale/shift.
    bn_weight = 1.0 + 0.1 * jax.random.normal(ks[7], (C,), dtype=jnp.float32)
    bn_bias = 0.1 * jax.random.normal(ks[8], (C,), dtype=jnp.float32)
    running_mean = 0.1 * jax.random.normal(ks[9], (C,), dtype=jnp.float32)
    running_var = 1.0 + 0.1 * jax.random.uniform(ks[10], (C,), dtype=jnp.float32)
    bn_scale = (bn_weight / jnp.sqrt(running_var + eps)).reshape(1, C)
    bn_shift = (bn_bias - running_mean.reshape(1, C) * bn_scale).reshape(1, C)
    # TODO(synk): training-mode BatchNorm (batch stats over B,H,W) would need an extra
    # cross-batch reduction pass; inference-mode running stats are used here.

    ref = spat_attn_reference(x, wq, bq, wk, bk, wv, bv, gamma, bn_scale, bn_shift)

    # f32 path, default tiles: single resident kv chunk -> plain-softmax specialization.
    out_f32 = spat_attn(x, wq, bq, wk, bk, wv, bv, gamma, bn_scale, bn_shift,
                        compute_dtype=jnp.float32)
    out_f32 = jax.block_until_ready(out_f32)
    assert out_f32.shape == (B, C, H, W)
    assert jnp.allclose(out_f32, ref, rtol=1e-2, atol=1e-2), "f32 kernel mismatch"

    # f32 path with forced small tiles: exercises the in-kernel online-softmax kv loop
    # and multiple query blocks per batch (grid = (2, 2), n_kv = 2).
    out_chunked = spat_attn(x, wq, bq, wk, bk, wv, bv, gamma, bn_scale, bn_shift,
                            compute_dtype=jnp.float32, tq=128, tkv=128)
    out_chunked = jax.block_until_ready(out_chunked)
    assert jnp.allclose(out_chunked, ref, rtol=1e-2, atol=1e-2), "chunked kernel mismatch"

    # Default path: bf16 streamed inputs / MXU operands, f32 accumulation.
    out_bf16 = spat_attn(x, wq, bq, wk, bk, wv, bv, gamma, bn_scale, bn_shift)
    out_bf16 = jax.block_until_ready(out_bf16)
    assert jnp.allclose(out_bf16, ref, rtol=5e-2, atol=5e-2), "bf16 kernel mismatch"

    # Ragged HW (10x10 = 100 -> padded to 128): exercises padded-key masking.
    x2 = jax.random.normal(ks[11], (1, C, 10, 10), dtype=jnp.float32)
    ref2 = spat_attn_reference(x2, wq, bq, wk, bk, wv, bv, gamma, bn_scale, bn_shift)
    out2 = spat_attn(x2, wq, bq, wk, bk, wv, bv, gamma, bn_scale, bn_shift,
                     compute_dtype=jnp.float32)
    out2 = jax.block_until_ready(out2)
    assert out2.shape == (1, C, 10, 10)
    assert jnp.allclose(out2, ref2, rtol=1e-2, atol=1e-2), "padded-HW kernel mismatch"

    print("KERNEL_OK")
</pallas_src>

<mosaic_0001>
module attributes {stable_mosaic.version = 11 : i64} {
  func.func @_spat_attn_kernel(%arg0: i32, %arg1: i32, %arg2: memref<1x16x256xf32, #tpu.memory_space<vmem>>, %arg3: memref<16x16xf32, #tpu.memory_space<vmem>>, %arg4: memref<16x1xf32, #tpu.memory_space<vmem>>, %arg5: memref<16x16xf32, #tpu.memory_space<vmem>>, %arg6: memref<16x1xf32, #tpu.memory_space<vmem>>, %arg7: memref<16x1xf32, #tpu.memory_space<vmem>>, %arg8: memref<16x1xf32, #tpu.memory_space<vmem>>, %arg9: memref<1x16x256xf32, #tpu.memory_space<vmem>>, %arg10: memref<16x256xf32, #tpu.memory_space<vmem>>) attributes {dimension_semantics = [#tpu.dimension_semantics<parallel>, #tpu.dimension_semantics<arbitrary>], iteration_bounds = array<i64: 2, 1>, scalar_prefetch = 0 : i64, scratch_operands = 1 : i64, tpu.core_type = #tpu.core_type<tc>, window_params = [{transform_indices = @transform_0, window_bounds = array<i64: 1, 16, 256>}, {pipeline_mode = #tpu.pipeline_mode<synchronous>, transform_indices = @transform_1, window_bounds = array<i64: 16, 16>}, {pipeline_mode = #tpu.pipeline_mode<synchronous>, transform_indices = @transform_2, window_bounds = array<i64: 16, 1>}, {pipeline_mode = #tpu.pipeline_mode<synchronous>, transform_indices = @transform_3, window_bounds = array<i64: 16, 16>}, {pipeline_mode = #tpu.pipeline_mode<synchronous>, transform_indices = @transform_4, window_bounds = array<i64: 16, 1>}, {pipeline_mode = #tpu.pipeline_mode<synchronous>, transform_indices = @transform_5, window_bounds = array<i64: 16, 1>}, {pipeline_mode = #tpu.pipeline_mode<synchronous>, transform_indices = @transform_6, window_bounds = array<i64: 16, 1>}, {transform_indices = @transform_7, window_bounds = array<i64: 1, 16, 256>}]} {
    %c0_i32 = arith.constant 0 : i32
    %0 = arith.cmpi eq, %arg1, %c0_i32 : i32
    %1 = arith.extui %0 : i1 to i32
    %c0_i32_0 = arith.constant 0 : i32
    %2 = arith.cmpi ne, %1, %c0_i32_0 : i32
    scf.if %2 {
      %c0_23 = arith.constant 0 : index
      %c0_24 = arith.constant 0 : index
      %c0_25 = arith.constant 0 : index
      %39 = vector.load %arg2[%c0_23, %c0_24, %c0_25] : memref<1x16x256xf32, #tpu.memory_space<vmem>>, vector<1x16x256xf32>
      %40 = vector.shape_cast %39 : vector<1x16x256xf32> to vector<16x256xf32>
      %c0_26 = arith.constant 0 : index
      %c0_27 = arith.constant 0 : index
      %41 = vector.load %arg5[%c0_26, %c0_27] : memref<16x16xf32, #tpu.memory_space<vmem>>, vector<16x16xf32>
      %cst_28 = arith.constant dense<0.000000e+00> : vector<16x256xf32>
      %42 = tpu.matmul %41, %40, %cst_28 {dimension_numbers = #tpu.dot_dimension_numbers<[0], [0], [1], [1], [0, 1, 1, 1], [], []>} : vector<16x16xf32>, vector<16x256xf32>, vector<16x256xf32> -> vector<16x256xf32>
      %c0_29 = arith.constant 0 : index
      %c0_30 = arith.constant 0 : index
      %43 = vector.load %arg6[%c0_29, %c0_30] : memref<16x1xf32, #tpu.memory_space<vmem>>, vector<16x1xf32>
      %44 = vector.broadcast %43 : vector<16x1xf32> to vector<16x256xf32>
      %45 = arith.addf %42, %44 : vector<16x256xf32>
      %c0_31 = arith.constant 0 : index
      %c0_32 = arith.constant 0 : index
      %46 = vector.load %arg10[%c0_31, %c0_32] : memref<16x256xf32, #tpu.memory_space<vmem>>, vector<16x256xf32>
      tpu.vector_store %arg10[%c0_31, %c0_32], %45 {strides = array<i32>} : memref<16x256xf32, #tpu.memory_space<vmem>>, vector<16x256xf32>,
    } else {
    }
    %c256_i32 = arith.constant 256 : i32
    %3 = arith.muli %arg1, %c256_i32 : i32
    %4 = tpu.assume_multiple %3, 256 : i32
    %c0 = arith.constant 0 : index
    %c0_1 = arith.constant 0 : index
    %5 = arith.index_cast %4 : i32 to index
    %6 = vector.load %arg2[%c0, %c0_1, %5] : memref<1x16x256xf32, #tpu.memory_space<vmem>>, vector<1x16x256xf32>
    %7 = vector.shape_cast %6 : vector<1x16x256xf32> to vector<16x256xf32>
    %c0_2 = arith.constant 0 : index
    %c0_3 = arith.constant 0 : index
    %8 = vector.load %arg3[%c0_2, %c0_3] : memref<16x16xf32, #tpu.memory_space<vmem>>, vector<16x16xf32>
    %cst = arith.constant dense<0.000000e+00> : vector<16x256xf32>
    %9 = tpu.matmul %8, %7, %cst {dimension_numbers = #tpu.dot_dimension_numbers<[0], [0], [1], [1], [0, 1, 1, 1], [], []>} : vector<16x16xf32>, vector<16x256xf32>, vector<16x256xf32> -> vector<16x256xf32>
    %c0_4 = arith.constant 0 : index
    %c0_5 = arith.constant 0 : index
    %10 = vector.load %arg4[%c0_4, %c0_5] : memref<16x1xf32, #tpu.memory_space<vmem>>, vector<16x1xf32>
    %11 = vector.broadcast %10 : vector<16x1xf32> to vector<16x256xf32>
    %12 = arith.addf %9, %11 : vector<16x256xf32>
    %c0_6 = arith.constant 0 : index
    %c0_7 = arith.constant 0 : index
    %c0_8 = arith.constant 0 : index
    %13 = vector.load %arg2[%c0_6, %c0_7, %c0_8] : memref<1x16x256xf32, #tpu.memory_space<vmem>>, vector<1x16x256xf32>
    %14 = vector.shape_cast %13 : vector<1x16x256xf32> to vector<16x256xf32>
    %cst_9 = arith.constant dense<0.000000e+00> : vector<256x256xf32>
    %15 = tpu.matmul %14, %12, %cst_9 {dimension_numbers = #tpu.dot_dimension_numbers<[0], [0], [1], [1], [0, 1, 1, 1], [], []>} : vector<16x256xf32>, vector<16x256xf32>, vector<256x256xf32> -> vector<256x256xf32>
    %cst_10 = arith.constant dense<0xFF800000> : vector<256xf32>
    %16 = vector.multi_reduction <maximumf>, %15, %cst_10 [0] : vector<256x256xf32> to vector<256xf32>
    %17 = vector.shape_cast %16 : vector<256xf32> to vector<1x256xf32>
    %18 = vector.broadcast %17 : vector<1x256xf32> to vector<256x256xf32>
    %19 = arith.subf %15, %18 : vector<256x256xf32>
    %20 = math.exp %19 : vector<256x256xf32>
    %cst_11 = arith.constant dense<0.000000e+00> : vector<256xf32>
    %21 = vector.multi_reduction <add>, %20, %cst_11 [0] : vector<256x256xf32> to vector<256xf32>
    %22 = vector.shape_cast %21 : vector<256xf32> to vector<1x256xf32>
    %c0_12 = arith.constant 0 : index
    %c0_13 = arith.constant 0 : index
    %23 = vector.load %arg10[%c0_12, %c0_13] : memref<16x256xf32, #tpu.memory_space<vmem>>, vector<16x256xf32>
    %cst_14 = arith.constant dense<0.000000e+00> : vector<16x256xf32>
    %24 = tpu.matmul %23, %20, %cst_14 {dimension_numbers = #tpu.dot_dimension_numbers<[1], [0], [0], [1], [0, 0, 1, 1], [], []>} : vector<16x256xf32>, vector<256x256xf32>, vector<16x256xf32> -> vector<16x256xf32>
    %25 = tpu.reciprocal %22 {approx = true} : vector<1x256xf32> -> vector<1x256xf32>
    %26 = vector.broadcast %25 : vector<1x256xf32> to vector<16x256xf32>
    %27 = arith.mulf %24, %26 : vector<16x256xf32>
    %cst_15 = arith.constant 0.000000e+00 : f32
    %28 = vector.broadcast %cst_15 : f32 to vector<16x256xf32>
    %29 = arith.maximumf %27, %28 : vector<16x256xf32>
    %c0_16 = arith.constant 0 : index
    %c0_17 = arith.constant 0 : index
    %30 = vector.load %arg7[%c0_16, %c0_17] : memref<16x1xf32, #tpu.memory_space<vmem>>, vector<16x1xf32>
    %31 = vector.broadcast %30 : vector<16x1xf32> to vector<16x256xf32>
    %32 = arith.mulf %29, %31 : vector<16x256xf32>
    %c0_18 = arith.constant 0 : index
    %c0_19 = arith.constant 0 : index
    %33 = vector.load %arg8[%c0_18, %c0_19] : memref<16x1xf32, #tpu.memory_space<vmem>>, vector<16x1xf32>
    %34 = vector.broadcast %33 : vector<16x1xf32> to vector<16x256xf32>
    %35 = arith.addf %32, %34 : vector<16x256xf32>
    %c0_20 = arith.constant 0 : index
    %c0_21 = arith.constant 0 : index
    %c0_22 = arith.constant 0 : index
    %36 = vector.load %arg9[%c0_20, %c0_21, %c0_22] : memref<1x16x256xf32, #tpu.memory_space<vmem>>, vector<1x16x256xf32>
    %37 = vector.shape_cast %36 : vector<1x16x256xf32> to vector<16x256xf32>
    %38 = vector.shape_cast %35 : vector<16x256xf32> to vector<1x16x256xf32>
    tpu.vector_store %arg9[%c0_20, %c0_21, %c0_22], %38 {strides = array<i32>} : memref<1x16x256xf32, #tpu.memory_space<vmem>>, vector<1x16x256xf32>,
    return
  }
  func.func @transform_0(%arg0: i32, %arg1: i32) -> (i32, i32, i32) {
    %c0_i32 = arith.constant 0 : i32
    %c0_i32_0 = arith.constant 0 : i32
    %c0_i32_1 = arith.constant 0 : i32
    return %arg0, %c0_i32, %c0_i32_0 : i32, i32, i32
  }
  func.func @transform_1(%arg0: i32, %arg1: i32) -> (i32, i32) {
    %c0_i32 = arith.constant 0 : i32
    %c0_i32_0 = arith.constant 0 : i32
    %c0_i32_1 = arith.constant 0 : i32
    return %c0_i32, %c0_i32_0 : i32, i32
  }
  func.func @transform_2(%arg0: i32, %arg1: i32) -> (i32, i32) {
    %c0_i32 = arith.constant 0 : i32
    %c0_i32_0 = arith.constant 0 : i32
    %c0_i32_1 = arith.constant 0 : i32
    return %c0_i32, %c0_i32_0 : i32, i32
  }
  func.func @transform_3(%arg0: i32, %arg1: i32) -> (i32, i32) {
    %c0_i32 = arith.constant 0 : i32
    %c0_i32_0 = arith.constant 0 : i32
    %c0_i32_1 = arith.constant 0 : i32
    return %c0_i32, %c0_i32_0 : i32, i32
  }
  func.func @transform_4(%arg0: i32, %arg1: i32) -> (i32, i32) {
    %c0_i32 = arith.constant 0 : i32
    %c0_i32_0 = arith.constant 0 : i32
    %c0_i32_1 = arith.constant 0 : i32
    return %c0_i32, %c0_i32_0 : i32, i32
  }
  func.func @transform_5(%arg0: i32, %arg1: i32) -> (i32, i32) {
    %c0_i32 = arith.constant 0 : i32
    %c0_i32_0 = arith.constant 0 : i32
    %c0_i32_1 = arith.constant 0 : i32
    return %c0_i32, %c0_i32_0 : i32, i32
  }
  func.func @transform_6(%arg0: i32, %arg1: i32) -> (i32, i32) {
    %c0_i32 = arith.constant 0 : i32
    %c0_i32_0 = arith.constant 0 : i32
    %c0_i32_1 = arith.constant 0 : i32
    return %c0_i32, %c0_i32_0 : i32, i32
  }
  func.func @transform_7(%arg0: i32, %arg1: i32) -> (i32, i32, i32) {
    %c0_i32 = arith.constant 0 : i32
    %c0_i32_0 = arith.constant 0 : i32
    return %arg0, %c0_i32, %arg1 : i32, i32, i32
  }
}

</mosaic_0001>

<bundles_post_ra>
// kernel: tpu_custom_call.1
= control target key start
LH: loop header
LB: loop body
LE: loop exit
PB: predicated region body
PF: predicated region fallthrough
CT: control target
= control target key end

     0   :  { %12 = vsyncpa [#allocation4], 0  ;;  %s2745_s0 = inlined_call_operand.hbm [shape: f32[2,16,256], index: 0, kind: input, shape index: {}]   ;;  %s2746_s1 = inlined_call_operand.vmem [shape: f32[16,16], index: 1, kind: input, shape index: {}]   ;;  %s2747_s2 = inlined_call_operand.vmem [shape: f32[16,1], index: 2, kind: input, shape index: {}]   ;;  %s2748_s3 = inlined_call_operand.vmem [shape: f32[16,16], index: 3, kind: input, shape index: {}]   ;;  %s2749_s4 = inlined_call_operand.vmem [shape: f32[16,1], index: 4, kind: input, shape index: {}]   ;;  %s2750_s5 = inlined_call_operand.vmem [shape: f32[16,1], index: 5, kind: input, shape index: {}]   ;;  %s2751_s6 = inlined_call_operand.vmem [shape: f32[16,1], index: 6, kind: input, shape index: {}]   ;;  %s2752_s7 = inlined_call_operand.hbm [shape: f32[2,16,256], index: 7, kind: output, shape index: {}]  }
   0x1   :  { %14 = vsyncpa [#allocation4 + $0x1], 0 }
   0x2   :  { %15 = vsyncpa [#allocation5], 0 }
   0x3   :  { %17 = vsyncpa [#allocation5 + $0x1], 0  ;;  %s1966_s24 = smov 0   ;;  %s1968_s25 = smov 0  }
   0x4   :  { %s1970_s26 = smov 0   ;;  %s1972_s27 = smov 0  }
   0x5   :  { %s1974_s28 = smov 0   ;;  %s1976_s29 = smov 0  }
   0x6 LB: > { %2777 = sst [smem:[#allocation9_spill]] %s1915_s28  ;;  %s1509_s30 = sadd.s32 4294967295, %s1919_s29   ;;  %s1919_s29 = sphi %s1976_s29, %s23_s29   ;;  %s1915_s28 = sphi %s1974_s28, %s2836_s28   ;;  %s1911_s27 = sphi %s1972_s27, %s2835_s27   ;;  %s1907_s26 = sphi %s1970_s26, %s2839_s26   ;;  %s1903_s25 = sphi %s1968_s25, %s2838_s25   ;;  %s1899_s24 = sphi %s1966_s24, %s2837_s24  }
   0x7   : > { %s1510_s8 = sadd.s32 4294967294, %s1919_s29   ;;  %s35_s9 = sadd.s32 1, %s1915_s28 }
   0x8   : > { %s42_s10 = sadd.s32 1, %s1907_s26  ;;  %p37_p0 = scmp.ge.s32.totalorder %s35_s9, 2 }
   0x9   : > { %p49_p1 = scmp.ne.s32.totalorder %s1907_s26, %s1903_s25  ;;  %p50_p2 = scmp.eq.s32.totalorder %s1919_s29, 0 }
   0xa   : > { %p55_p3 = scmp.ne.s32.totalorder %s1903_s25, %s1899_s24  ;;  %s2841_s9 = smov (%p37_p0, %s35_s9), 0 }
   0xb   : > { %2778 = sst [smem:[#allocation10_spill]] %s2841_s9  ;;  %p2007_p4 = por %p50_p2, %p49_p1 }
   0xc   : > { %p56_p5 = scmp.eq.s32.totalorder %s1509_s30, 0  ;;  %s39_s12 = ssub.s32 %s1915_s28, %s2841_s9 }
   0xd   : > { %p207_p6 = scmp.eq.s32.totalorder %s1509_s30, 1  ;;  %p40_p7 = scmp.eq.s32.totalorder %s39_s12, 0 }
   0xe   : > { %p2013_p8 = por %p56_p5, %p55_p3  ;;  %p213_p10 = scmp.eq.s32.totalorder %s1510_s8, 1 }
   0xf   : > { %p2017_p9 = por %p207_p6, %p49_p1  ;;  %p1512_p12 = scmp.ge.s32.totalorder %s1919_s29, 2 }
  0x10   : > { %s2022_s15 = scalar_select %p40_p7, %s1907_s26, %s42_s10  }
  0x11   : > { %p2024_p11 = por %p213_p10, %p55_p3  ;;  %p1616_p13 = scmp.lt.s32.totalorder %s1919_s29, 2 }
  0x12   : > { %s251_s17 = sand.u32 1, %s1907_s26   ;;  %s1596_s19 = sshll.u32 %s1915_s28, 5 }
  0x13   : > { %s1513_s18 = sshll.u32 %s251_s17, 5  ;;  %s260_s22 = scalar_lea.hbm %s2745_s0, %s1596_s19 }
  0x14   : > { %s255_s23 = scalar_lea.vmem [#allocation3], %s1513_s18  ;;  %s261_s12 = sshll.u32 %s260_s22, 4  ;;  %s262_s12 = int_to_ptr.hbm [resolvable:$true] %s261_s12 }
  0x15   : > { %s263_s30 = sshll.u32 %s255_s23, 4  ;;  %p1609_p0 = pnand %p1616_p13, %p2007_p4  ;;  %s264_s30 = int_to_ptr.vmem [resolvable:$true] %s263_s30 }
  0x16   : > { %p1516_p1 = scmp.ge.s32.totalorder %s1919_s29, 1  ;;  %s252_s8 = scalar_lea.sflag [#allocation4], %s251_s17 }
  0x17   : > { %s1921_s10 = smov 256   ;;  %s1922_s9 = smov 16  }
  0x18   : > { %1611 = dma.hbm_to_vmem [thread:$0]  (!%p1609_p0), %s262_s12, 512, %s264_s30, %s252_s8, %s1921_s10, %s1921_s10, %s1922_s9  }
  0x19   : > { %p271_p2 = scmp.lt.s32.totalorder %s1919_s29, 3 }
  0x1b   : > { %p272_p3 = pnand %p1516_p1, %p271_p2 }
  0x1d   : > { %275 = sbr.rel (%p272_p3) target bundleno = 942 (0x3ae), region = 48 }
  0x22   : > { %s2040_s28 = sand.u32 1, %s1903_s25  }
  0x23   : > { %s1517_s18 = sshll.u32 %s2040_s28, 5  ;;  %s278_s19 = scalar_lea.sflag [#allocation4], %s2040_s28 }
  0x24   : > { %s281_s11 = scalar_lea.vmem [#allocation3], %s1517_s18 }
  0x25   : > { %1890 = dma.done.wait (%p2013_p8), %s278_s19, 512  }
  0x26   : > { %1892 = vsyncadd (%p2013_p8), %s278_s19, 4294966784  ;;  %v434_v0 = vld [vmem:[%s2746_s1] sm:$0xff]  ;;  %v535_v2 = vld [vmem:[%s281_s11 + $0x10] sm:$0xff]  ;;  %v1923_v9 = vmov 0   ;;  %vm368_vm0 = vcmask 130048   ;;  %s2700_s19 = scalar_lea.vmem [#allocation6], %s1517_s18 }
  0x27   : > { %v322_v1 = vld [vmem:[%s2748_s3] sm:$0xff]  ;;  %448 = vxpose.xlu1.b32.start [1/2] (short) (narrow) %v434_v0, 16  ;;  %389 = vmatpush.msra.mxu0 %v535_v2  ;;  %v321_v3 = vld [vmem:[%s281_s11 + $0x18] sm:$0xff]  ;;  %v435_v5 = vld [vmem:[%s2746_s1 + $0x8] sm:$0xff]  ;;  %s1597_s18 = sshll.u32 %s1911_s27, 5  ;;  %s1420_s20 = sshll.u32 %s2700_s19, 4  ;;  %s1421_s20 = int_to_ptr.vmem [resolvable:$true] %s1420_s20 }
  0x28   : > { %336 = vxpose.xlu0.b32.start [1/2] (short) (narrow) %v322_v1, 16  ;;  %1598 = vmatpush.msra.mxu2 %v535_v2  ;;  %v533_v4 = vld [vmem:[%s281_s11] sm:$0xff]  ;;  %v323_v6 = vld [vmem:[%s2748_s3 + $0x8] sm:$0xff]  ;;  %s1419_s17 = scalar_lea.hbm %s2752_s7, %s1597_s18  ;;  %s1406_s13 = scalar_lea.sflag [#allocation5], %s2040_s28 }
  0x29   : > { %412 = vmatpush.msra.mxu1 %v321_v3  ;;  %524 = vmatpush.msra.mxu3 %v321_v3  ;;  %v431_v7 = vld [vmem:[%s281_s11 + $0x8] sm:$0xff]  ;;  %v436_v10 = vld [vmem:[%s2747_s2] sm:$0xff]  ;;  %s1422_s21 = sshll.u32 %s1419_s17, 4  ;;  %s1857_s12 = scalar_lea.hbm %s2752_s7, 64  ;;  %s1423_s21 = int_to_ptr.hbm [resolvable:$true] %s1422_s21 }
  0x2a   : > { %390 = vmatpush.msra.mxu0 %v533_v4  ;;  %1599 = vmatpush.msra.mxu2 %v533_v4  ;;  %v437_v8 = vld [vmem:[%s2747_s2 + $0x8] sm:$0xff]  ;;  %v324_v13 = vld [vmem:[%s2749_s4] sm:$0xff]  ;;  %s1851_s27 = sshra.s32 %s1423_s21, 4  ;;  %s1852_s27 = int_to_ptr.hbm [resolvable:$true] %s1851_s27 }
  0x2b   : > { %525 = vmatpush.msra.mxu3 %v431_v7  ;;  %413 = vmatpush.msra.mxu1 %v431_v7  ;;  %v325_v16 = vld [vmem:[%s2749_s4 + $0x8] sm:$0xff]  ;;  %v1385_v17 = vld [vmem:[%s2751_s6] sm:$0xff]  ;;  %s1853_s22 = scalar_lea.hbm %s1852_s27, 32  ;;  %p1858_p7 = scmp.lt.s32.totalorder %s1852_s27, %s2752_s7 }
  0x2c   : > { %501 = vmatpush.msrb.mxu2 %v535_v2  ;;  %1672 = vset.pattern.permute.xlu2 %v1923_v9  ;;  %v1386_v18 = vld [vmem:[%s2751_s6 + $0x8] sm:$0xff]  ;;  %p1854_p4 = scmp.ne.s32.totalorder %s1852_s27, %s1853_s22  ;;  %p1859_p8 = scmp.lt.s32.totalorder %s1857_s12, %s1853_s22 }
  0x2d   : > { %445 = vperm.xlu2 %1672, %v437_v8  }
  0x2e   : > { %502 = vmatpush.msrb.mxu2 %v533_v4  ;;  %p1855_p5 = pnand %p1854_p4, %p2017_p9  ;;  %p1860_p10 = por %p1859_p8, %p1858_p7 }
  0x2f   : > { %449 = vxpose.xlu1.b32.end [2/2] (short) (narrow) %v435_v5, 16 }
  0x30   : > { %337 = vxpose.xlu0.b32.end [2/2] (short) (narrow) %v323_v6, 16  ;;  %p1856_p6 = pneg %p1855_p5 }
  0x32   : > { %p1861_p13 = pnand %p1860_p10, %p1856_p6 }
  0x35   : > { %440 = vperm.xlu2 %1672, %v436_v10  }
  0x37   : > { %569 = vxpose.xlu1.b32.start [1/2] (short) %v431_v7, 128 }
  0x38   : > { %537 = vxpose.xlu0.b32.start [1/2] (short) %v533_v4, 128 }
  0x3d   : > { %328 = vperm.xlu2 %1672, %v324_v13  }
  0x3f   : > { %570 = vxpose.xlu1.b32.end [2/2] (short) %v321_v3, 128 }
  0x40   : > { %538 = vxpose.xlu0.b32.end [2/2] (short) %v535_v2, 128 }
  0x45   : > { %333 = vperm.xlu2 %1672, %v325_v16  }
  0x4d   : > { %1389 = vperm.xlu2 %1672, %v1385_v17  }
  0x55   : > { %1394 = vperm.xlu2 %1672, %v1386_v18  }
  0x87   : > { %v446_v22 = vpop.permute.xlu2 %445 }
  0x8f   : > { %v441_v27 = vpop.permute.xlu2 %440 }
  0x92   : > { %1674 = vset.pattern.permute.xlu1 %v1923_v9 }
  0xa7   : > { %1673 = vset.pattern.permute.xlu0 %v1923_v9 }
  0xcb   : > { %v464_v11 = vpop.trf.xlu1 }
  0xcc   : > { %v352_v12 = vpop.trf.xlu0  ;;  %1525 = vmatmul.msk.f32.vlgmr.msra.gmra.mxu3 %vm368_vm0, %v464_v11 }
  0xcd   : > { %1519 = vmatmul.msk.f32.vlgmr.msra.gmra.mxu0 %vm368_vm0, %v352_v12  ;;  %1521 = vmatmul.msk.f32.vlgmr.msra.gmra.mxu1 %vm368_vm0, %v352_v12 }
  0xd3   : > { %v465_v14 = vpop.trf.xlu1 }
  0xd4   : > { %v353_v15 = vpop.trf.xlu0  ;;  %1526 = vmatmul.msk.f32.gmra.mxu3 %vm368_vm0, %v465_v14 }
  0xd5   : > { %1520 = vmatmul.msk.f32.vlgmr.msra.gmra.mxu2 %vm368_vm0, %v353_v15  ;;  %1522 = vmatmul.msk.f32.gmra.mxu1 %vm368_vm0, %v353_v15 }
  0xdb   : > { %v2088_v21 = vpop.trf.xlu1 }
  0xdc   : > { %v553_v19 = vpop.trf.xlu0 }
  0xdd   : > { %1523 = vmatmul.msk.f32.vlgmr.msrb.gmra.mxu2 %vm368_vm0, %v464_v11 }
  0xe3   : > { %v2090_v25 = vpop.trf.xlu1 }
  0xe4   : > { %v554_v20 = vpop.trf.xlu0 }
  0xe5   : > { %1524 = vmatmul.msk.f32.gmra.mxu2 %vm368_vm0, %v465_v14 }
  0xeb   : > { %v2094_v32 = vpop.trf.xlu1 }
  0xec   : > { %v555_v24 = vpop.trf.xlu0 }
  0xf3   : > { %v2097_v34 = vpop.trf.xlu1 }
  0xf4   : > { %v556_v31 = vpop.trf.xlu0 }
  0xfb   : > { %v589_v39 = vpop.trf.xlu1 }
  0xfc   : > { %v557_v35 = vpop.trf.xlu0 }
 0x103   : > { %v590_v41 = vpop.trf.xlu1 }
 0x104   : > { %v558_v40 = vpop.trf.xlu0 }
 0x10b   : > { %v591_v43 = vpop.trf.xlu1 }
 0x10c   : > { %v559_v42 = vpop.trf.xlu0 }
 0x113   : > { %v592_v45 = vpop.trf.xlu1 }
 0x114   : > { %v560_v44 = vpop.trf.xlu0 }
 0x11b   : > { %v593_v46 = vpop.trf.xlu1 }
 0x11c   : > { %v561_v47 = vpop.trf.xlu0 }
 0x123   : > { %v594_v48 = vpop.trf.xlu1 }
 0x124   : > { %v562_v49 = vpop.trf.xlu0 }
 0x12b   : > { %v595_v50 = vpop.trf.xlu1 }
 0x12c   : > { %v563_v51 = vpop.trf.xlu0 }
 0x133   : > { %v596_v52 = vpop.trf.xlu1 }
 0x134   : > { %v564_v53 = vpop.trf.xlu0 }
 0x13b   : > { %v597_v54 = vpop.trf.xlu1 }
 0x13c   : > { %v565_v55 = vpop.trf.xlu0 }
 0x143   : > { %v598_v56 = vpop.trf.xlu1 }
 0x144   : > { %v566_v57 = vpop.trf.xlu0 }
 0x14a   : > { %v2148_v59 = vpop.f32.mrf.mxu1  ;;  %v2163_v1 = vpop.f32.mrf.mxu0 }
 0x14b   : > { %v599_v58 = vpop.trf.xlu1  ;;  %2784 = vst [vmem:[#allocation12_spill] sm:$0xff] %v2148_v59 }
 0x14c   : > { %v567_v60 = vpop.trf.xlu0  ;;  %2786 = vst [vmem:[#allocation14_spill] sm:$0xff] %v2163_v1 }
 0x14f   : > { %v527_v23 = vpop.f32.mrf.mxu3 }
 0x150   : > { %v528_v29 = vadd.f32 %v527_v23, %v441_v27 }
 0x152   : > { %v2154_v62 = vpop.f32.mrf.mxu1 }
 0x153   : > { %v600_v61 = vpop.trf.xlu1  ;;  %2785 = vst [vmem:[#allocation13_spill] sm:$0xff] %v2154_v62 }
 0x154   : > { %v568_v63 = vpop.trf.xlu0 }
 0x157   : > { %v530_v28 = vpop.f32.mrf.mxu3 }
 0x158   : > { %v2092_v26 = vpop.f32.mrf.mxu2  ;;  %v531_v30 = vadd.f32 %v530_v28, %v446_v22 }
 0x159   : > { %2783 = vst [vmem:[#allocation11_spill] sm:$0xff] %v2092_v26 }
 0x15a   : > { %824 = vmatpush.msrb.mxu1 %v531_v30  ;;  %1602 = vmatpush.msrb.mxu3 %v531_v30 }
 0x15c   : > { %825 = vmatpush.msrb.mxu1 %v528_v29  ;;  %1603 = vmatpush.msrb.mxu3 %v528_v29 }
 0x15d   : > { %1559 = vmatmul.msk.f32.vlgmr.msrb.gmra.mxu1 %vm368_vm0, %v553_v19  ;;  %1578 = vmatmul.msk.f32.vlgmr.msrb.gmra.mxu3 %vm368_vm0, %v2097_v34 }
 0x160   : > { %v504_v33 = vpop.f32.mrf.mxu2 }
 0x161   : > { %v505_v38 = vadd.f32 %v504_v33, %v441_v27 }
 0x165   : > { %1560 = vmatmul.msk.f32.gmra.mxu1 %vm368_vm0, %v554_v20  ;;  %1579 = vmatmul.msk.f32.gmra.mxu3 %vm368_vm0, %v589_v39 }
 0x168   : > { %v507_v36 = vpop.f32.mrf.mxu2 }
 0x169   : > { %v508_v37 = vadd.f32 %v507_v36, %v446_v22 }
 0x16b   : > { %711 = vmatpush.msrb.mxu0 %v508_v37  ;;  %1600 = vmatpush.msra.mxu2 %v508_v37 }
 0x16d   : > { %712 = vmatpush.msrb.mxu0 %v505_v38  ;;  %1601 = vmatpush.msra.mxu2 %v505_v38 }
 0x16e   : > { %1527 = vmatmul.msk.f32.vlgmr.msrb.gmra.mxu0 %vm368_vm0, %v553_v19  ;;  %1561 = vmatmul.msk.f32.gmra.mxu1 %vm368_vm0, %v555_v24 }
 0x16f   : > { %1547 = vmatmul.msk.f32.vlgmr.msra.gmra.mxu2 %vm368_vm0, %v589_v39  ;;  %1580 = vmatmul.msk.f32.gmra.mxu3 %vm368_vm0, %v590_v41 }
 0x176   : > { %1528 = vmatmul.msk.f32.gmra.mxu0 %vm368_vm0, %v554_v20  ;;  %1562 = vmatmul.msk.f32.gmra.mxu1 %vm368_vm0, %v556_v31 }
 0x177   : > { %1548 = vmatmul.msk.f32.gmra.mxu2 %vm368_vm0, %v590_v41  ;;  %1581 = vmatmul.msk.f32.gmra.mxu3 %vm368_vm0, %v591_v43 }
 0x17e   : > { %1529 = vmatmul.msk.f32.gmra.mxu0 %vm368_vm0, %v555_v24  ;;  %1563 = vmatmul.msk.f32.gmra.mxu1 %vm368_vm0, %v557_v35 }
 0x17f   : > { %1549 = vmatmul.msk.f32.gmra.mxu2 %vm368_vm0, %v591_v43  ;;  %1582 = vmatmul.msk.f32.gmra.mxu3 %vm368_vm0, %v592_v45 }
 0x186   : > { %1530 = vmatmul.msk.f32.gmra.mxu0 %vm368_vm0, %v556_v31  ;;  %1564 = vmatmul.msk.f32.gmra.mxu1 %vm368_vm0, %v558_v40 }
 0x187   : > { %1550 = vmatmul.msk.f32.gmra.mxu2 %vm368_vm0, %v592_v45  ;;  %1583 = vmatmul.msk.f32.gmra.mxu3 %vm368_vm0, %v593_v46 }
 0x18e   : > { %1531 = vmatmul.msk.f32.gmra.mxu0 %vm368_vm0, %v557_v35  ;;  %1565 = vmatmul.msk.f32.gmra.mxu1 %vm368_vm0, %v559_v42 }
 0x18f   : > { %1551 = vmatmul.msk.f32.gmra.mxu2 %vm368_vm0, %v593_v46  ;;  %1584 = vmatmul.msk.f32.gmra.mxu3 %vm368_vm0, %v594_v48 }
 0x196   : > { %1532 = vmatmul.msk.f32.gmra.mxu0 %vm368_vm0, %v558_v40  ;;  %1566 = vmatmul.msk.f32.gmra.mxu1 %vm368_vm0, %v560_v44 }
 0x197   : > { %1552 = vmatmul.msk.f32.gmra.mxu2 %vm368_vm0, %v594_v48  ;;  %1585 = vmatmul.msk.f32.gmra.mxu3 %vm368_vm0, %v595_v50 }
 0x19e   : > { %1533 = vmatmul.msk.f32.gmra.mxu0 %vm368_vm0, %v559_v42  ;;  %1567 = vmatmul.msk.f32.gmra.mxu1 %vm368_vm0, %v561_v47 }
 0x19f   : > { %1553 = vmatmul.msk.f32.gmra.mxu2 %vm368_vm0, %v595_v50  ;;  %1586 = vmatmul.msk.f32.gmra.mxu3 %vm368_vm0, %v596_v52 }
 0x1a6   : > { %1534 = vmatmul.msk.f32.gmra.mxu0 %vm368_vm0, %v560_v44  ;;  %1568 = vmatmul.msk.f32.gmra.mxu1 %vm368_vm0, %v562_v49 }
 0x1a7   : > { %1554 = vmatmul.msk.f32.gmra.mxu2 %vm368_vm0, %v596_v52  ;;  %1587 = vmatmul.msk.f32.gmra.mxu3 %vm368_vm0, %v597_v54 }
 0x1ae   : > { %1535 = vmatmul.msk.f32.gmra.mxu0 %vm368_vm0, %v561_v47  ;;  %1569 = vmatmul.msk.f32.gmra.mxu1 %vm368_vm0, %v563_v51 }
 0x1af   : > { %1555 = vmatmul.msk.f32.gmra.mxu2 %vm368_vm0, %v597_v54  ;;  %1588 = vmatmul.msk.f32.gmra.mxu3 %vm368_vm0, %v598_v56 }
 0x1b6   : > { %1536 = vmatmul.msk.f32.gmra.mxu0 %vm368_vm0, %v562_v49  ;;  %1570 = vmatmul.msk.f32.gmra.mxu1 %vm368_vm0, %v564_v53 }
 0x1b7   : > { %1556 = vmatmul.msk.f32.gmra.mxu2 %vm368_vm0, %v598_v56  ;;  %1589 = vmatmul.msk.f32.gmra.mxu3 %vm368_vm0, %v599_v58 }
 0x1be   : > { %1537 = vmatmul.msk.f32.gmra.mxu0 %vm368_vm0, %v563_v51  ;;  %1571 = vmatmul.msk.f32.gmra.mxu1 %vm368_vm0, %v565_v55 }
 0x1bf   : > { %1557 = vmatmul.msk.f32.gmra.mxu2 %vm368_vm0, %v599_v58  ;;  %1590 = vmatmul.msk.f32.gmra.mxu3 %vm368_vm0, %v600_v61 }
 0x1c6   : > { %1538 = vmatmul.msk.f32.gmra.mxu0 %vm368_vm0, %v564_v53  ;;  %1572 = vmatmul.msk.f32.gmra.mxu1 %vm368_vm0, %v566_v57 }
 0x1c7   : > { %1558 = vmatmul.msk.f32.gmra.mxu2 %vm368_vm0, %v600_v61 }
 0x1ce   : > { %1539 = vmatmul.msk.f32.gmra.mxu0 %vm368_vm0, %v565_v55  ;;  %1573 = vmatmul.msk.f32.gmra.mxu1 %vm368_vm0, %v567_v60 }
 0x1d6   : > { %1540 = vmatmul.msk.f32.gmra.mxu0 %vm368_vm0, %v566_v57  ;;  %1574 = vmatmul.msk.f32.gmra.mxu1 %vm368_vm0, %v568_v63 }
 0x1da   : > { %v2158_v0 = vpop.f32.mrf.mxu1 }
 0x1de   : > { %1541 = vmatmul.msk.f32.gmra.mxu0 %vm368_vm0, %v567_v60  ;;  %1575 = vmatmul.msk.f32.gmra.mxu1 %vm368_vm0, %v2088_v21 }
 0x1e0   : > { %v2190_v9 = vpop.f32.mrf.mxu3 }
 0x1e2   : > { %v2165_v2 = vpop.f32.mrf.mxu1 }
 0x1e6   : > { %1542 = vmatmul.msk.f32.gmra.mxu0 %vm368_vm0, %v568_v63  ;;  %1576 = vmatmul.msk.f32.gmra.mxu1 %vm368_vm0, %v2090_v25 }
 0x1e8   : > { %v2198_v12 = vpop.f32.mrf.mxu3 }
 0x1eb   : > { %v2170_v3 = vpop.f32.mrf.mxu0  ;;  %v2172_v4 = vpop.f32.mrf.mxu1 }
 0x1ec   : > { %v960_v51 = vmax.f32 %v2158_v0, %v2172_v4 }
 0x1ee   : > { %1543 = vmatmul.msk.f32.gmra.mxu0 %vm368_vm0, %v2088_v21  ;;  %1577 = vmatmul.msk.f32.gmra.mxu1 %vm368_vm0, %v2094_v32 }
 0x1f2   : > { %v2204_v15 = vpop.f32.mrf.mxu3  ;;  %v2226_v27 = vpop.f32.mrf.mxu2 }
 0x1f3   : > { %v2178_v5 = vpop.f32.mrf.mxu0  ;;  %v2180_v6 = vpop.f32.mrf.mxu1  ;;  %2787 = vst [vmem:[#allocation15_spill] sm:$0xff] %v2204_v15 }
 0x1f4   : > { %2791 = vst [vmem:[#allocation19_spill] sm:$0xff] %v2226_v27  ;;  %v961_v44 = vmax.f32 %v2165_v2, %v2180_v6 }
 0x1f6   : > { %1544 = vmatmul.msk.f32.gmra.mxu0 %vm368_vm0, %v2090_v25 }
 0x1fa   : > { %v2214_v20 = vpop.f32.mrf.mxu3  ;;  %v2234_v31 = vpop.f32.mrf.mxu2 }
 0x1fb   : > { %v2184_v7 = vpop.f32.mrf.mxu0  ;;  %v2186_v8 = vpop.f32.mrf.mxu1  ;;  %2793 = vst [vmem:[#allocation21_spill] sm:$0xff] %v2234_v31 }
 0x1fc   : > { %v962_v53 = vmax.f32 %v960_v51, %v2186_v8 }
 0x1fe   : > { %1545 = vmatmul.msk.f32.gmra.mxu0 %vm368_vm0, %v2094_v32 }
 0x202   : > { %v2220_v23 = vpop.f32.mrf.mxu3  ;;  %v2242_v35 = vpop.f32.mrf.mxu2 }
 0x203   : > { %v2192_v10 = vpop.f32.mrf.mxu0  ;;  %v2194_v11 = vpop.f32.mrf.mxu1  ;;  %2790 = vst [vmem:[#allocation18_spill] sm:$0xff] %v2220_v23 }
 0x204   : > { %2794 = vst [vmem:[#allocation22_spill] sm:$0xff] %v2242_v35  ;;  %v963_v47 = vmax.f32 %v961_v44, %v2194_v11 }
 0x206   : > { %1546 = vmatmul.msk.f32.gmra.mxu0 %vm368_vm0, %v2097_v34 }
 0x20a   : > { %v2228_v28 = vpop.f32.mrf.mxu3  ;;  %v2252_v40 = vpop.f32.mrf.mxu2 }
 0x20b   : > { %v2200_v13 = vpop.f32.mrf.mxu0  ;;  %v2202_v14 = vpop.f32.mrf.mxu1  ;;  %2796 = vst [vmem:[#allocation24_spill] sm:$0xff] %v2252_v40 }
 0x20c   : > { %v964_v55 = vmax.f32 %v962_v53, %v2202_v14 }
 0x212   : > { %v2236_v32 = vpop.f32.mrf.mxu3  ;;  %v2262_v45 = vpop.f32.mrf.mxu2 }
 0x213   : > { %v2206_v16 = vpop.f32.mrf.mxu0  ;;  %v2208_v17 = vpop.f32.mrf.mxu1  ;;  %2797 = vst [vmem:[#allocation25_spill] sm:$0xff] %v2262_v45 }
 0x214   : > { %2788 = vst [vmem:[#allocation16_spill] sm:$0xff] %v2206_v16  ;;  %v965_v49 = vmax.f32 %v963_v47, %v2208_v17 }
 0x21a   : > { %v2246_v37 = vpop.f32.mrf.mxu3  ;;  %v2279_v57 = vpop.f32.mrf.mxu2 }
 0x21b   : > { %v2210_v18 = vpop.f32.mrf.mxu0  ;;  %v2212_v19 = vpop.f32.mrf.mxu1 }
 0x21c   : > { %v966_v60 = vmax.f32 %v964_v55, %v2212_v19 }
 0x222   : > { %v2254_v41 = vpop.f32.mrf.mxu3  ;;  %v2295_v62 = vpop.f32.mrf.mxu2 }
 0x223   : > { %v2216_v21 = vpop.f32.mrf.mxu0  ;;  %v2218_v22 = vpop.f32.mrf.mxu1 }
 0x224   : > { %2789 = vst [vmem:[#allocation17_spill] sm:$0xff] %v2216_v21  ;;  %v967_v52 = vmax.f32 %v965_v49, %v2218_v22 }
 0x22a   : > { %v2264_v46 = vpop.f32.mrf.mxu3 }
 0x22b   : > { %v2222_v24 = vpop.f32.mrf.mxu0  ;;  %v2224_v25 = vpop.f32.mrf.mxu1 }
 0x22c   : > { %v968_v47 = vmax.f32 %v966_v60, %v2224_v25 }
 0x232   : > { %v2281_v58 = vpop.f32.mrf.mxu3 }
 0x233   : > { %v2230_v29 = vpop.f32.mrf.mxu0  ;;  %v2232_v30 = vpop.f32.mrf.mxu1  ;;  %2798 = vst [vmem:[#allocation26_spill] sm:$0xff] %v2281_v58 }
 0x234   : > { %2792 = vst [vmem:[#allocation20_spill] sm:$0xff] %v2230_v29  ;;  %v969_v54 = vmax.f32 %v967_v52, %v2232_v30 }
 0x23a   : > { %v2299_v59 = vpop.f32.mrf.mxu3 }
 0x23b   : > { %v2238_v33 = vpop.f32.mrf.mxu0  ;;  %v2240_v34 = vpop.f32.mrf.mxu1 }
 0x23c   : > { %v970_v51 = vmax.f32 %v968_v47, %v2240_v34 }
 0x243   : > { %v2244_v36 = vpop.f32.mrf.mxu1  ;;  %v2248_v38 = vpop.f32.mrf.mxu0 }
 0x244   : > { %2795 = vst [vmem:[#allocation23_spill] sm:$0xff] %v2248_v38  ;;  %v971_v56 = vmax.f32 %v969_v54, %v2244_v36 }
 0x24b   : > { %v2250_v39 = vpop.f32.mrf.mxu1  ;;  %v2256_v42 = vpop.f32.mrf.mxu0 }
 0x24c   : > { %v972_v53 = vmax.f32 %v970_v51, %v2250_v39 }
 0x253   : > { %v2258_v43 = vpop.f32.mrf.mxu1  ;;  %v2267_v48 = vpop.f32.mrf.mxu0 }
 0x254   : > { %v973_v61 = vmax.f32 %v971_v56, %v2258_v43 }
 0x25b   : > { %v2270_v50 = vpop.f32.mrf.mxu1  ;;  %v2285_v63 = vpop.f32.mrf.mxu0 }
 0x25c   : > { %v974_v55 = vmax.f32 %v972_v53, %v2270_v50 }
 0x263   : > { %v2287_v44 = vpop.f32.mrf.mxu1  ;;  %v2303_v60 = vpop.f32.mrf.mxu0 }
 0x264   : > { %v975_v49 = vmax.f32 %v973_v61, %v2287_v44 }
 0x266   : > { %v977_v52 = vmax.f32 %v975_v49, %v2190_v9  ;;  %v938_v49 = vmax.f32 %v2234_v31, %v2226_v27 }
 0x268   : > { %v979_v54 = vmax.f32 %v977_v52, %v2204_v15  ;;  %v924_v52 = vmax.f32 %v2178_v5, %v2192_v10  ;;  %v2317_v15 = vpop.f32.mrf.mxu2 }
 0x26a   : > { %v981_v56 = vmax.f32 %v979_v54, %v2220_v23  ;;  %v926_v1 = vmax.f32 %v924_v52, %v2206_v16  ;;  %v939_v23 = vmax.f32 %v2242_v35, %v938_v49  ;;  %v2327_v49 = vpop.f32.mrf.mxu3 }
 0x26b   : > { %v2301_v26 = vpop.f32.mrf.mxu1  ;;  %2799 = vst [vmem:[#allocation27_spill] sm:$0xff] %v2327_v49 }
 0x26c   : > { %v976_v61 = vmax.f32 %v974_v55, %v2301_v26  ;;  %v983_v47 = vmax.f32 %v981_v56, %v2236_v32  ;;  %v923_v56 = vmax.f32 %v2170_v3, %v2184_v7  ;;  %v941_v52 = vmax.f32 %v939_v23, %v2252_v40 }
 0x26e   : > { %v978_v51 = vmax.f32 %v976_v61, %v2198_v12  ;;  %v985_v54 = vmax.f32 %v983_v47, %v2254_v41  ;;  %v928_v61 = vmax.f32 %v926_v1, %v2216_v21  ;;  %v943_v23 = vmax.f32 %v941_v52, %v2262_v45 }
 0x270   : > { %v980_v53 = vmax.f32 %v978_v51, %v2214_v20  ;;  %v987_v27 = vmax.f32 %v985_v54, %v2281_v58  ;;  %v925_v51 = vmax.f32 %v923_v56, %v2200_v13  ;;  %v930_v47 = vmax.f32 %v928_v61, %v2230_v29  ;;  %v2341_v58 = vpop.f32.mrf.mxu2 }
 0x272   : > { %v982_v55 = vmax.f32 %v980_v53, %v2228_v28  ;;  %v2329_v53 = vpop.f32.mrf.mxu0  ;;  %v927_v16 = vmax.f32 %v925_v51, %v2210_v18  ;;  %v932_v1 = vmax.f32 %v930_v47, %v2248_v38  ;;  %v989_v54 = vmax.f32 %v987_v27, %v2327_v49 }
 0x274   : > { %v984_v31 = vmax.f32 %v982_v55, %v2246_v37  ;;  %v929_v56 = vmax.f32 %v927_v16, %v2222_v24  ;;  %v934_v61 = vmax.f32 %v932_v1, %v2267_v48 }
 0x276   : > { %v986_v35 = vmax.f32 %v984_v31, %v2264_v46  ;;  %v931_v29 = vmax.f32 %v929_v56, %v2238_v33  ;;  %v936_v21 = vmax.f32 %v934_v61, %v2303_v60 }
 0x278   : > { %v988_v55 = vmax.f32 %v986_v35, %v2299_v59  ;;  %v933_v51 = vmax.f32 %v931_v29, %v2256_v42  ;;  %v940_v35 = vmax.f32 %v2279_v57, %v943_v23  ;;  %v2350_v45 = vpop.f32.mrf.mxu2 }
 0x27a   : > { %v990_v40 = vmax.f32 %v988_v55, %v989_v54  ;;  %v935_v27 = vmax.f32 %v933_v51, %v2285_v63  ;;  %v942_v16 = vmax.f32 %v940_v35, %v936_v21  ;;  %v2346_v1 = vpop.f32.mrf.mxu0 }
 0x27c   : > { %v991_v31 = vrot.slane %v990_v40, 4  ;;  %v937_v52 = vmax.f32 %v935_v27, %v2329_v53  ;;  %v944_v54 = vmax.f32 %v942_v16, %v2295_v62 }
 0x27e   : > { %v992_v47 = vmax.f32 %v990_v40, %v991_v31  ;;  %v946_v61 = vmax.f32 %v944_v54, %v937_v52 }
 0x280   : > { %v993_v38 = vrot.slane %v992_v47, 2  ;;  %v945_v29 = vmax.f32 %v2317_v15, %v946_v61  ;;  %v2367_v16 = vpop.f32.mrf.mxu2 }
 0x282   : > { %v994_v55 = vmax.f32 %v992_v47, %v993_v38  ;;  %v2355_v40 = vpop.f32.mrf.mxu0  ;;  %v947_v21 = vmax.f32 %v945_v29, %v2346_v1 }
 0x284   : > { %v995_v56 = vrot.slane %v994_v55, 1  ;;  %v949_v35 = vmax.f32 %v947_v21, %v2341_v58 }
 0x286   : > { %v2352_v49 = vmax.f32 %v994_v55, %v995_v56 }
 0x288   : > { %v998_v23 = vsub.f32 %v2158_v0, %v2352_v49  ;;  %v1000_v38 = vsub.f32 %v2165_v2, %v2352_v49  ;;  %v1002_v31 = vsub.f32 %v2172_v4, %v2352_v49  ;;  %v1004_v51 = vsub.f32 %v2180_v6, %v2352_v49 }
 0x289   : > { %v1006_v52 = vsub.f32 %v2186_v8, %v2352_v49  ;;  %v951_v0 = vmax.f32 %v949_v35, %v2355_v40  ;;  %v1008_v2 = vsub.f32 %v2194_v11, %v2352_v49  ;;  %v1010_v6 = vsub.f32 %v2202_v14, %v2352_v49 }
 0x28a   : > { %v1063_v47 = vmul.f32 1.442695, %v998_v23  ;;  %v1067_v27 = vmul.f32 1.442695, %v1000_v38  ;;  %v1071_v55 = vmul.f32 1.442695, %v1002_v31  ;;  %v2374_v54 = vpop.f32.mrf.mxu0  ;;  %v1012_v8 = vsub.f32 %v2208_v17, %v2352_v49 }
 0x28b   : > { %v1075_v4 = vmul.f32 1.442695, %v1004_v51  ;;  %v1079_v56 = vmul.f32 1.442695, %v1006_v52  ;;  %v948_v61 = vmax.f32 %v2350_v45, %v951_v0  ;;  %v1083_v29 = vmul.f32 1.442695, %v1008_v2  ;;  %v2390_v51 = vpop.f32.mrf.mxu2 }
 0x28c   : > { %1675 = vpow2.f32 %v1063_v47  ;;  %v1014_v38 = vsub.f32 %v2212_v19, %v2352_v49  ;;  %v1087_v14 = vmul.f32 1.442695, %v1010_v6  ;;  %v1016_v17 = vsub.f32 %v2218_v22, %v2352_v49 }
 0x28d   : > { %1677 = vpow2.f32 %v1067_v27  ;;  %v950_v21 = vmax.f32 %v948_v61, %v2374_v54  ;;  %v1091_v47 = vmul.f32 1.442695, %v1012_v8  ;;  %v1018_v19 = vsub.f32 %v2224_v25, %v2352_v49 }
 0x28e   : > { %1679 = vpow2.f32 %v1071_v55  ;;  %v1095_v0 = vmul.f32 1.442695, %v1014_v38  ;;  %v1020_v22 = vsub.f32 %v2232_v30, %v2352_v49  ;;  %v1022_v25 = vsub.f32 %v2240_v34, %v2352_v49 }
 0x28f   : > { %1681 = vpow2.f32 %v1075_v4  ;;  %v952_v27 = vmax.f32 %v950_v21, %v2367_v16  ;;  %v1103_v21 = vmul.f32 1.442695, %v1018_v19  ;;  %v1024_v30 = vsub.f32 %v2244_v36, %v2352_v49 }
 0x290   : > { %1683 = vpow2.f32 %v1079_v56  ;;  %v1099_v56 = vmul.f32 1.442695, %v1016_v17  ;;  %v1107_v17 = vmul.f32 1.442695, %v1020_v22  ;;  %v1026_v34 = vsub.f32 %v2250_v39, %v2352_v49 }
 0x291   : > { %1685 = vpow2.f32 %v1083_v29  ;;  %v953_v2 = vmax.f32 %v2390_v51, %v952_v27  ;;  %v1111_v19 = vmul.f32 1.442695, %v1022_v25  ;;  %v1028_v36 = vsub.f32 %v2258_v43, %v2352_v49 }
 0x292   : > { %v2382_v23 = vpop.eup %1675  ;;  %1687 = vpow2.f32 %v1087_v14  ;;  %v1115_v22 = vmul.f32 1.442695, %v1024_v30  ;;  %v1032_v39 = vsub.f32 %v2287_v44, %v2352_v49  ;;  %v1119_v25 = vmul.f32 1.442695, %v1026_v34 }
 0x293   : > { %2800 = vst [vmem:[#allocation28_spill] sm:$0xff] %v2382_v23  ;;  %v2384_v11 = vpop.eup %1677  ;;  %1689 = vpow2.f32 %v1091_v47  ;;  %v954_v61 = vrot.slane %v953_v2, 4  ;;  %v1123_v30 = vmul.f32 1.442695, %v1028_v36 }
 0x294   : > { %2801 = vst [vmem:[#allocation29_spill] sm:$0xff] %v2384_v11  ;;  %v1226_v31 = vadd.f32 %v2384_v11, %v2382_v23  ;;  %v2392_v35 = vpop.eup %1679  ;;  %1691 = vpow2.f32 %v1095_v0 }
 0x295   : > { %v2398_v55 = vpop.eup %1681  ;;  %v955_v38 = vmax.f32 %v953_v2, %v954_v61  ;;  %1693 = vpow2.f32 %v1099_v56  ;;  %v1030_v56 = vsub.f32 %v2270_v50, %v2352_v49  ;;  %v1036_v50 = vsub.f32 %v2190_v9, %v2352_v49 }
 0x296   : > { %v1227_v52 = vadd.f32 %v2392_v35, %v1226_v31  ;;  %v2404_v6 = vpop.eup %1683  ;;  %1695 = vpow2.f32 %v1103_v21  ;;  %v1034_v21 = vsub.f32 %v2301_v26, %v2352_v49  ;;  %v2802_v26 = vld [vmem:[#allocation15_spill] sm:$0xff] }
 0x297   : > { %v2409_v29 = vpop.eup %1685  ;;  %v956_v47 = vrot.slane %v955_v38, 2  ;;  %1697 = vpow2.f32 %v1107_v17  ;;  %v1038_v17 = vsub.f32 %v2198_v12, %v2352_v49  ;;  %v1040_v34 = vsub.f32 %v2802_v26, %v2352_v49  ;;  %v2803_v12 = vld [vmem:[#allocation18_spill] sm:$0xff] }
 0x298   : > { %v1228_v4 = vadd.f32 %v2398_v55, %v1227_v52  ;;  %v2414_v31 = vpop.eup %1687  ;;  %1699 = vpow2.f32 %v1111_v19  ;;  %v1042_v19 = vsub.f32 %v2214_v20, %v2352_v49  ;;  %v1046_v20 = vsub.f32 %v2228_v28, %v2352_v49 }
 0x299   : > { %v2419_v52 = vpop.eup %1689  ;;  %v957_v2 = vmax.f32 %v955_v38, %v956_v47  ;;  %1701 = vpow2.f32 %v1115_v22  ;;  %v1127_v47 = vmul.f32 1.442695, %v1030_v56  ;;  %v1044_v56 = vsub.f32 %v2803_v12, %v2352_v49 }
 0x29a   : > { %v1229_v8 = vadd.f32 %v2404_v6, %v1228_v4  ;;  %v2424_v4 = vpop.eup %1691  ;;  %1703 = vpow2.f32 %v1119_v25  ;;  %v1143_v23 = vmul.f32 1.442695, %v1038_v17  ;;  %v1050_v28 = vsub.f32 %v2246_v37, %v2352_v49 }
 0x29b   : > { %v958_v43 = vrot.slane %v957_v2, 1  ;;  %1705 = vpow2.f32 %v1123_v30  ;;  %v1048_v30 = vsub.f32 %v2236_v32, %v2352_v49  ;;  %v1155_v17 = vmul.f32 1.442695, %v1044_v56 }
 0x29c   : > { %v1230_v14 = vadd.f32 %v2409_v29, %v1229_v8  ;;  %v2431_v8 = vpop.eup %1693  ;;  %1707 = vpow2.f32 %v1127_v47  ;;  %v1054_v12 = vsub.f32 %v2264_v46, %v2352_v49 }
 0x29d   : > { %v2452_v36 = vmax.f32 %v957_v2, %v958_v43  ;;  %v1151_v2 = vmul.f32 1.442695, %v1042_v19 }
 0x29e   : > { %v1231_v27 = vadd.f32 %v2414_v31, %v1230_v14  ;;  %v2438_v14 = vpop.eup %1695 }
 0x29f   : > { %v999_v43 = vsub.f32 %v2178_v5, %v2452_v36  ;;  %v1159_v5 = vmul.f32 1.442695, %v1046_v20 }
 0x2a0   : > { %v1232_v0 = vadd.f32 %v2419_v52, %v1231_v27  ;;  %v2445_v27 = vpop.eup %1697 }
 0x2a1   : > { %v2454_v22 = vpop.eup %1699  ;;  %v1065_v37 = vmul.f32 1.442695, %v999_v43  ;;  %v2811_v43 = vld [vmem:[#allocation16_spill] sm:$0xff] }
 0x2a2   : > { %v1233_v61 = vadd.f32 %v2424_v4, %v1232_v0  ;;  %v1131_v0 = vmul.f32 1.442695, %v1032_v39  ;;  %v2459_v11 = vpop.eup %1701  ;;  %v1147_v39 = vmul.f32 1.442695, %v1040_v34  ;;  %v1001_v34 = vsub.f32 %v2184_v7, %v2452_v36 }
 0x2a3   : > { %v1167_v7 = vmul.f32 1.442695, %v1050_v28 }
 0x2a4   : > { %v1234_v38 = vadd.f32 %v2431_v8, %v1233_v61  ;;  %v1135_v61 = vmul.f32 1.442695, %v1034_v21  ;;  %1709 = vpow2.f32 %v1131_v0  ;;  %v997_v21 = vsub.f32 %v2170_v3, %v2452_v36 }
 0x2a5   : > { %v1052_v3 = vsub.f32 %v2254_v41, %v2352_v49  ;;  %v1069_v20 = vmul.f32 1.442695, %v1001_v34 }
 0x2a6   : > { %v1235_v44 = vadd.f32 %v2438_v14, %v1234_v38  ;;  %v1139_v38 = vmul.f32 1.442695, %v1036_v50  ;;  %1711 = vpow2.f32 %v1135_v61  ;;  %v2468_v50 = vpop.eup %1703  ;;  %v1061_v0 = vmul.f32 1.442695, %v997_v21 }
 0x2a7   : > { %v1163_v61 = vmul.f32 1.442695, %v1048_v30  ;;  %v1007_v30 = vsub.f32 %v2811_v43, %v2452_v36  ;;  %v1025_v43 = vsub.f32 %v2285_v63, %v2452_v36 }
 0x2a8   : > { %v1236_v9 = vadd.f32 %v2445_v27, %v1235_v44  ;;  %1713 = vpow2.f32 %v1139_v38  ;;  %v2475_v44 = vpop.eup %1705 }
 0x2a9   : > { %1715 = vpow2.f32 %v1143_v23  ;;  %v2481_v19 = vpop.eup %1707 }
 0x2aa   : > { %v1237_v26 = vadd.f32 %v2454_v22, %v1236_v9  ;;  %1717 = vpow2.f32 %v1147_v39  ;;  %2804 = vst [vmem:[#allocation15_spill] sm:$0xff] %v2481_v19  ;;  %v2484_v23 = vpop.eup %1709  ;;  %v1003_v9 = vsub.f32 %v2192_v10, %v2452_v36  ;;  %v2809_v10 = vld [vmem:[#allocation26_spill] sm:$0xff] }
 0x2ab   : > { %1719 = vpow2.f32 %v1151_v2  ;;  %2805 = vst [vmem:[#allocation18_spill] sm:$0xff] %v2484_v23  ;;  %v1056_v2 = vsub.f32 %v2809_v10, %v2352_v49 }
 0x2ac   : > { %v1238_v25 = vadd.f32 %v2459_v11, %v1237_v26  ;;  %1721 = vpow2.f32 %v1155_v17  ;;  %v2488_v41 = vpop.eup %1711  ;;  %v1005_v26 = vsub.f32 %v2200_v13, %v2452_v36  ;;  %v1073_v17 = vmul.f32 1.442695, %v1003_v9  ;;  %v2812_v9 = vld [vmem:[#allocation17_spill] sm:$0xff] }
 0x2ad   : > { %2806 = vst [vmem:[#allocation30_spill] sm:$0xff] %v2488_v41  ;;  %1723 = vpow2.f32 %v1061_v0  ;;  %v1058_v13 = vsub.f32 %v2299_v59, %v2352_v49  ;;  %v1011_v59 = vsub.f32 %v2812_v9, %v2452_v36 }
 0x2ae   : > { %v1239_v47 = vadd.f32 %v2468_v50, %v1238_v25  ;;  %v2493_v38 = vpop.eup %1713  ;;  %1725 = vpow2.f32 %v1065_v37  ;;  %v1171_v25 = vmul.f32 1.442695, %v1052_v3  ;;  %v1009_v3 = vsub.f32 %v2210_v18, %v2452_v36 }
 0x2af   : > { %2807 = vst [vmem:[#allocation31_spill] sm:$0xff] %v2493_v38  ;;  %v2497_v39 = vpop.eup %1715  ;;  %1727 = vpow2.f32 %v1159_v5  ;;  %v1179_v37 = vmul.f32 1.442695, %v1056_v2  ;;  %v1183_v18 = vmul.f32 1.442695, %v1058_v13 }
 0x2b0   : > { %v1240_v32 = vadd.f32 %v2475_v44, %v1239_v47  ;;  %2808 = vst [vmem:[#allocation32_spill] sm:$0xff] %v2497_v39  ;;  %v2502_v21 = vpop.eup %1717  ;;  %1729 = vpow2.f32 %v1163_v61  ;;  %v1175_v47 = vmul.f32 1.442695, %v1054_v12  ;;  %v1027_v12 = vsub.f32 %v2303_v60, %v2452_v36 }
 0x2b1   : > { %2810 = vst [vmem:[#allocation26_spill] sm:$0xff] %v2502_v21  ;;  %v2506_v28 = vpop.eup %1719  ;;  %1731 = vpow2.f32 %v1167_v7  ;;  %v1085_v60 = vmul.f32 1.442695, %v1009_v3  ;;  %v1089_v13 = vmul.f32 1.442695, %v1011_v59 }
 0x2b2   : > { %v1241_v56 = vadd.f32 %v2481_v19, %v1240_v32  ;;  %v2511_v5 = vpop.eup %1721  ;;  %1733 = vpow2.f32 %v1069_v20  ;;  %v1077_v32 = vmul.f32 1.442695, %v1005_v26  ;;  %v1013_v20 = vsub.f32 %v2222_v24, %v2452_v36 }
 0x2b3   : > { %v2515_v0 = vpop.eup %1723  ;;  %1735 = vpow2.f32 %v1171_v25  ;;  %v2813_v25 = vld [vmem:[#allocation20_spill] sm:$0xff]  ;;  %v1121_v63 = vmul.f32 1.442695, %v1027_v12 }
 0x2b4   : > { %v1242_v46 = vadd.f32 %v2484_v23, %v1241_v56  ;;  %v2520_v7 = vpop.eup %1725  ;;  %1737 = vpow2.f32 %v1073_v17  ;;  %v1081_v56 = vmul.f32 1.442695, %v1007_v30 }
 0x2b5   : > { %v2524_v10 = vpop.eup %1727  ;;  %1739 = vpow2.f32 %v1175_v47  ;;  %v1189_v47 = vadd.f32 %v2520_v7, %v2515_v0 }
 0x2b6   : > { %v1243_v34 = vadd.f32 %v2488_v41, %v1242_v46  ;;  %v2529_v2 = vpop.eup %1729  ;;  %v1015_v46 = vsub.f32 %v2813_v25, %v2452_v36  ;;  %1741 = vpow2.f32 %v1077_v32 }
 0x2b7   : > { %v2535_v30 = vpop.eup %1731  ;;  %1743 = vpow2.f32 %v1179_v37  ;;  %v1093_v37 = vmul.f32 1.442695, %v1013_v20 }
 0x2b8   : > { %v1244_v61 = vadd.f32 %v2493_v38, %v1243_v34  ;;  %v2540_v24 = vpop.eup %1733  ;;  %v1017_v34 = vsub.f32 %v2238_v33, %v2452_v36  ;;  %1745 = vpow2.f32 %v1081_v56  ;;  %v1021_v33 = vsub.f32 %v2256_v42, %v2452_v36 }
 0x2b9   : > { %v2546_v3 = vpop.eup %1735  ;;  %1747 = vpow2.f32 %v1183_v18  ;;  %v1190_v9 = vadd.f32 %v2540_v24, %v1189_v47  ;;  %v1097_v18 = vmul.f32 1.442695, %v1015_v46  ;;  %v2815_v47 = vld [vmem:[#allocation23_spill] sm:$0xff] }
 0x2ba   : > { %v1245_v26 = vadd.f32 %v2497_v39, %v1244_v61  ;;  %v1023_v61 = vsub.f32 %v2267_v48, %v2452_v36  ;;  %v2550_v59 = vpop.eup %1737  ;;  %1749 = vpow2.f32 %v1085_v60  ;;  %v1117_v48 = vmul.f32 1.442695, %v1025_v43 }
 0x2bb   : > { %v2556_v56 = vpop.eup %1739  ;;  %1751 = vpow2.f32 %v1089_v13  ;;  %v1191_v20 = vadd.f32 %v2550_v59, %v1190_v9  ;;  %v1019_v19 = vsub.f32 %v2815_v47, %v2452_v36  ;;  %v1101_v43 = vmul.f32 1.442695, %v1017_v34 }
 0x2bc   : > { %v1246_v17 = vadd.f32 %v2502_v21, %v1245_v26  ;;  %v2814_v26 = vld [vmem:[#allocation27_spill] sm:$0xff]  ;;  %v1113_v23 = vmul.f32 1.442695, %v1023_v61  ;;  %1753 = vpow2.f32 %v1121_v63  ;;  %v1109_v46 = vmul.f32 1.442695, %v1021_v33 }
 0x2bd   : > { %v1060_v25 = vsub.f32 %v2814_v26, %v2352_v49  ;;  %1755 = vpow2.f32 %v1093_v37  ;;  %v1105_v47 = vmul.f32 1.442695, %v1019_v19 }
 0x2be   : > { %v1247_v32 = vadd.f32 %v2506_v28, %v1246_v17  ;;  %v2560_v17 = vpop.eup %1741  ;;  %1757 = vpow2.f32 %v1117_v48 }
 0x2bf   : > { %v2564_v49 = vpop.eup %1743  ;;  %v1192_v60 = vadd.f32 %v2560_v17, %v1191_v20  ;;  %v1187_v9 = vmul.f32 1.442695, %v1060_v25  ;;  %1759 = vpow2.f32 %v1097_v18 }
 0x2c0   : > { %v1248_v12 = vadd.f32 %v2511_v5, %v1247_v32  ;;  %v2568_v32 = vpop.eup %1745  ;;  %1761 = vpow2.f32 %v1113_v23  ;;  %v1059_v23 = vsub.f32 %v2390_v51, %v2452_v36 }
 0x2c1   : > { %v2570_v13 = vpop.eup %1747  ;;  %v1193_v61 = vadd.f32 %v2568_v32, %v1192_v60  ;;  %1763 = vpow2.f32 %v1101_v43  ;;  %v1029_v43 = vsub.f32 %v2329_v53, %v2452_v36 }
 0x2c2   : > { %v1249_v42 = vadd.f32 %v2524_v10, %v1248_v12  ;;  %v2574_v63 = vpop.eup %1749  ;;  %1765 = vpow2.f32 %v1109_v46 }
 0x2c3   : > { %v2576_v37 = vpop.eup %1751  ;;  %v1194_v33 = vadd.f32 %v2574_v63, %v1193_v61  ;;  %1767 = vpow2.f32 %v1187_v9  ;;  %v1057_v9 = vsub.f32 %v2367_v16, %v2452_v36  ;;  %v1033_v16 = vsub.f32 %v2355_v40, %v2452_v36 }
 0x2c4   : > { %v1250_v26 = vadd.f32 %v2529_v2, %v1249_v42  ;;  %v2580_v48 = vpop.eup %1753  ;;  %1769 = vpow2.f32 %v1105_v47  ;;  %v1125_v41 = vmul.f32 1.442695, %v1029_v43  ;;  %v1051_v40 = vsub.f32 %v2317_v15, %v2452_v36 }
 0x2c5   : > { %v1756_v25 = vpop.eup %1755  ;;  %v1195_v18 = vadd.f32 %v2576_v37, %v1194_v33  ;;  %1267 = vmatpush.msrb.mxu2 %v2580_v48  ;;  %v1055_v33 = vsub.f32 %v2350_v45, %v2452_v36  ;;  %v1035_v45 = vsub.f32 %v2374_v54, %v2452_v36  ;;  %v2818_v54 = vld [vmem:[#allocation21_spill] sm:$0xff] }
 0x2c6   : > { %v1251_v34 = vadd.f32 %v2535_v30, %v1250_v26  ;;  %v1758_v19 = vpop.eup %1757 }
 0x2c7   : > { %v1760_v20 = vpop.eup %1759  ;;  %v1196_v60 = vadd.f32 %v1756_v25, %v1195_v18  ;;  %1268 = vmatpush.msrb.mxu2 %v1758_v19  ;;  %v1177_v43 = vmul.f32 1.442695, %v1055_v33  ;;  %v1047_v33 = vsub.f32 %v2279_v57, %v2452_v36 }
 0x2c8   : > { %v1252_v12 = vadd.f32 %v2546_v3, %v1251_v34  ;;  %v1762_v46 = vpop.eup %1761  ;;  %v1031_v34 = vsub.f32 %v2346_v1, %v2452_v36  ;;  %v1053_v1 = vsub.f32 %v2341_v58, %v2452_v36  ;;  %v1133_v58 = vmul.f32 1.442695, %v1033_v16  ;;  %v2820_v16 = vld [vmem:[#allocation25_spill] sm:$0xff] }
 0x2c9   : > { %v1764_v26 = vpop.eup %1763  ;;  %v1197_v51 = vadd.f32 %v1760_v20, %v1196_v60  ;;  %1269 = vmatpush.msrb.mxu2 %v1762_v46  ;;  %v1181_v60 = vmul.f32 1.442695, %v1057_v9 }
 0x2ca   : > { %v1253_v42 = vadd.f32 %v2556_v56, %v1252_v12  ;;  %v1766_v47 = vpop.eup %1765  ;;  %v1185_v12 = vmul.f32 1.442695, %v1059_v23  ;;  %v1129_v23 = vmul.f32 1.442695, %v1031_v34  ;;  %v1137_v34 = vmul.f32 1.442695, %v1035_v45 }
 0x2cb   : > { %v2597_v53 = vpop.eup %1767  ;;  %v1198_v38 = vadd.f32 %v1764_v26, %v1197_v51  ;;  %1270 = vmatpush.msrb.mxu2 %v1766_v47  ;;  %v1161_v45 = vmul.f32 1.442695, %v1047_v33 }
 0x2cc   : > { %v1254_v61 = vadd.f32 %v2564_v49, %v1253_v42  ;;  %v1770_v42 = vpop.eup %1769  ;;  %1771 = vpow2.f32 %v1185_v12  ;;  %v1169_v12 = vmul.f32 1.442695, %v1051_v40 }
 0x2cd   : > { %v1199_v21 = vadd.f32 %v1770_v42, %v1198_v38  ;;  %1271 = vmatpush.msrb.mxu2 %v1770_v42  ;;  %1773 = vpow2.f32 %v1125_v41  ;;  %v1039_v38 = vsub.f32 %v2818_v54, %v2452_v36  ;;  %v2819_v41 = vld [vmem:[#allocation22_spill] sm:$0xff]  ;;  %v1045_v42 = vsub.f32 %v2820_v16, %v2452_v36 }
 0x2ce   : > { %v1255_v18 = vadd.f32 %v2570_v13, %v1254_v61  ;;  %v2817_v61 = vld [vmem:[#allocation19_spill] sm:$0xff]  ;;  %1775 = vpow2.f32 %v1181_v60 }
 0x2cf   : > { %v1037_v51 = vsub.f32 %v2817_v61, %v2452_v36  ;;  %v1200_v9 = vadd.f32 %v1766_v47, %v1199_v21  ;;  %1272 = vmatpush.msrb.mxu2 %v1764_v26  ;;  %1777 = vpow2.f32 %v1129_v23  ;;  %v1041_v21 = vsub.f32 %v2819_v41, %v2452_v36 }
 0x2d0   : > { %v2605_v39 = vadd.f32 %v2597_v53, %v1255_v18  ;;  %v1049_v18 = vsub.f32 %v2295_v62, %v2452_v36  ;;  %1779 = vpow2.f32 %v1177_v43  ;;  %v1145_v57 = vmul.f32 1.442695, %v1039_v38 }
 0x2d1   : > { %v1201_v15 = vadd.f32 %v1762_v46, %v1200_v9  ;;  %1273 = vmatpush.msrb.mxu2 %v1760_v20  ;;  %1781 = vpow2.f32 %v1133_v58  ;;  %v1141_v26 = vmul.f32 1.442695, %v1037_v51 }
 0x2d2   : > { %2816 = vst [vmem:[#allocation16_spill] sm:$0xff] %v2605_v39  ;;  %v1173_v39 = vmul.f32 1.442695, %v1053_v1  ;;  %v2621_v47 = vpop.eup %1771  ;;  %v1165_v1 = vmul.f32 1.442695, %v1049_v18 }
 0x2d3   : > { %v1202_v62 = vadd.f32 %v1758_v19, %v1201_v15  ;;  %1274 = vmatpush.msrb.mxu2 %v1756_v25  ;;  %v2625_v20 = vpop.eup %1773  ;;  %1290 = vmatpush.msra.mxu3 %v2621_v47  ;;  %v2821_v25 = vld [vmem:[#allocation24_spill] sm:$0xff] }
 0x2d4   : > { %1783 = vpow2.f32 %v1173_v39  ;;  %v2630_v60 = vpop.eup %1775  ;;  %v1043_v19 = vsub.f32 %v2821_v25, %v2452_v36  ;;  %v1149_v39 = vmul.f32 1.442695, %v1041_v21  ;;  %v2822_v21 = vld [vmem:[#allocation14_spill] sm:$0xff] }
 0x2d5   : > { %1785 = vpow2.f32 %v1137_v34  ;;  %v1203_v46 = vadd.f32 %v2580_v48, %v1202_v62  ;;  %1275 = vmatpush.msrb.mxu2 %v2576_v37  ;;  %v2634_v23 = vpop.eup %1777  ;;  %1291 = vmatpush.msra.mxu3 %v2630_v60  ;;  %v1157_v37 = vmul.f32 1.442695, %v1045_v42 }
 0x2d6   : > { %1787 = vpow2.f32 %v1169_v12  ;;  %v2639_v48 = vpop.eup %1779  ;;  %v1153_v51 = vmul.f32 1.442695, %v1043_v19 }
 0x2d7   : > { %1789 = vpow2.f32 %v1141_v26  ;;  %v1204_v40 = vadd.f32 %v2625_v20, %v1203_v46  ;;  %1276 = vmatpush.msrb.mxu2 %v2574_v63  ;;  %v1782_v43 = vpop.eup %1781  ;;  %1292 = vmatpush.msra.mxu3 %v2639_v48 }
 0x2d8   : > { %1791 = vpow2.f32 %v1165_v1 }
 0x2d9   : > { %1793 = vpow2.f32 %v1145_v57  ;;  %v1205_v36 = vadd.f32 %v2634_v23, %v1204_v40  ;;  %1277 = vmatpush.msrb.mxu2 %v2568_v32  ;;  %v329_v32 = vpop.permute.xlu2 %328 }
 0x2da   : > { %v1784_v61 = vpop.eup %1783  ;;  %1795 = vpow2.f32 %v1161_v45  ;;  %v393_v26 = vadd.f32 %v2822_v21, %v329_v32  ;;  %v2834_v45 = vld [vmem:[#allocation16_spill] sm:$0xff] }
 0x2db   : > { %v1786_v58 = vpop.eup %1785  ;;  %1797 = vpow2.f32 %v1149_v39  ;;  %v1206_v9 = vadd.f32 %v1782_v43, %v1205_v36  ;;  %1293 = vmatpush.msra.mxu3 %v1784_v61  ;;  %1278 = vmatpush.msrb.mxu2 %v2560_v17 }
 0x2dc   : > { %v1788_v63 = vpop.eup %1787  ;;  %1799 = vpow2.f32 %v1157_v37 }
 0x2dd   : > { %v1790_v18 = vpop.eup %1789  ;;  %v1207_v54 = vadd.f32 %v1786_v58, %v1206_v9  ;;  %1294 = vmatpush.msra.mxu3 %v1788_v63  ;;  %1279 = vmatpush.msrb.mxu2 %v2550_v59  ;;  %1801 = vpow2.f32 %v1153_v51 }
 0x2de   : > { %v1792_v38 = vpop.eup %1791 }
 0x2df   : > { %v1794_v34 = vpop.eup %1793  ;;  %v1208_v15 = vadd.f32 %v1790_v18, %v1207_v54  ;;  %1295 = vmatpush.msra.mxu3 %v1792_v38  ;;  %1280 = vmatpush.msrb.mxu2 %v2540_v24 }
 0x2e0   : > { %v1796_v33 = vpop.eup %1795 }
 0x2e1   : > { %v1798_v12 = vpop.eup %1797  ;;  %v1209_v41 = vadd.f32 %v1794_v34, %v1208_v15  ;;  %1296 = vmatpush.msra.mxu3 %v1796_v33  ;;  %1281 = vmatpush.msrb.mxu2 %v2520_v7  ;;  %v334_v42 = vpop.permute.xlu2 %333  ;;  %v2823_v7 = vld [vmem:[#allocation11_spill] sm:$0xff] }
 0x2e2   : > { %v1800_v17 = vpop.eup %1799  ;;  %v396_v57 = vadd.f32 %v2823_v7, %v334_v42 }
 0x2e3   : > { %v1210_v62 = vadd.f32 %v1798_v12, %v1209_v41  ;;  %1297 = vmatpush.msra.mxu3 %v1800_v17  ;;  %1282 = vmatpush.msrb.mxu2 %v2515_v0  ;;  %v1802_v59 = vpop.eup %1801  ;;  %v1369_v0 = vld [vmem:[%s2750_s5] sm:$0xff] }
 0x2e4   : > { %1283 = vmatmul.f32.vlgmr.msrb.gmra.mxu2 %v393_v26  ;;  %1373 = vperm.xlu0 %1673, %v1369_v0  }
 0x2e5   : > { %v1211_v16 = vadd.f32 %v1802_v59, %v1210_v62  ;;  %1298 = vmatpush.msra.mxu3 %v1802_v59  ;;  %1313 = vmatpush.msra.mxu2 %v2475_v44 }
 0x2e7   : > { %v1212_v24 = vadd.f32 %v1800_v17, %v1211_v16  ;;  %1299 = vmatpush.msra.mxu3 %v1798_v12  ;;  %1314 = vmatpush.msra.mxu2 %v2468_v50 }
 0x2e9   : > { %v1213_v1 = vadd.f32 %v1796_v33, %v1212_v24  ;;  %1300 = vmatpush.msra.mxu3 %v1794_v34  ;;  %1315 = vmatpush.msra.mxu2 %v2459_v11 }
 0x2eb   : > { %v1214_v46 = vadd.f32 %v1792_v38, %v1213_v1  ;;  %1301 = vmatpush.msra.mxu3 %v1790_v18  ;;  %1316 = vmatpush.msra.mxu2 %v2454_v22  ;;  %v2824_v22 = vld [vmem:[#allocation12_spill] sm:$0xff] }
 0x2ec   : > { %1286 = vmatmul.f32.gmra.mxu2 %v396_v57  ;;  %v416_v25 = vadd.f32 %v2824_v22, %v329_v32 }
 0x2ed   : > { %v1215_v44 = vadd.f32 %v1788_v63, %v1214_v46  ;;  %1302 = vmatpush.msra.mxu3 %v1786_v58  ;;  %1317 = vmatpush.msra.mxu2 %v2445_v27  ;;  %v1370_v27 = vld [vmem:[%s2750_s5 + $0x8] sm:$0xff] }
 0x2ee   : > { %1378 = vperm.xlu1 %1674, %v1370_v27  }
 0x2ef   : > { %v1216_v50 = vadd.f32 %v1784_v61, %v1215_v44  ;;  %1303 = vmatpush.msra.mxu3 %v1782_v43  ;;  %1318 = vmatpush.msra.mxu2 %v2438_v14 }
 0x2f1   : > { %v1217_v11 = vadd.f32 %v2639_v48, %v1216_v50  ;;  %1304 = vmatpush.msra.mxu3 %v2634_v23  ;;  %1319 = vmatpush.msra.mxu2 %v2431_v8  ;;  %v1257_v23 = vrot.slane %v2834_v45, 4  ;;  %v1390_v48 = vpop.permute.xlu2 %1389 }
 0x2f3   : > { %v1218_v19 = vadd.f32 %v2630_v60, %v1217_v11  ;;  %1305 = vmatpush.msra.mxu3 %v2625_v20  ;;  %1320 = vmatpush.msra.mxu2 %v2424_v4  ;;  %v2825_v4 = vld [vmem:[#allocation13_spill] sm:$0xff]  ;;  %v1258_v36 = vadd.f32 %v1257_v23, %v2834_v45 }
 0x2f4   : > { %1306 = vmatmul.f32.vlgmr.msra.gmra.mxu3 %v416_v25  ;;  %v419_v8 = vadd.f32 %v2825_v4, %v334_v42 }
 0x2f5   : > { %v1219_v14 = vadd.f32 %v2621_v47, %v1218_v19  ;;  %1336 = vmatpush.msrb.mxu3 %v2597_v53  ;;  %1321 = vmatpush.msra.mxu2 %v2419_v52  ;;  %v2830_v52 = vld [vmem:[#allocation31_spill] sm:$0xff]  ;;  %v1259_v63 = vrot.slane %v1258_v36, 2 }
 0x2f7   : > { %1337 = vmatpush.msrb.mxu3 %v2570_v13  ;;  %1322 = vmatpush.msra.mxu2 %v2414_v31  ;;  %v2826_v31 = vld [vmem:[#allocation29_spill] sm:$0xff]  ;;  %v1260_v32 = vadd.f32 %v1259_v63, %v1258_v36 }
 0x2f9   : > { %1338 = vmatpush.msrb.mxu3 %v2564_v49  ;;  %1323 = vmatpush.msra.mxu2 %v2409_v29  ;;  %v2827_v29 = vld [vmem:[#allocation28_spill] sm:$0xff]  ;;  %v1395_v34 = vpop.permute.xlu2 %1394  ;;  %v1261_v33 = vrot.slane %v1260_v32, 1 }
 0x2fb   : > { %1339 = vmatpush.msrb.mxu3 %v2556_v56  ;;  %1324 = vmatpush.msra.mxu2 %v2404_v6  ;;  %v2828_v6 = vld [vmem:[#allocation26_spill] sm:$0xff]  ;;  %v1262_v12 = vadd.f32 %v1261_v33, %v1260_v32 }
 0x2fc   : > { %1309 = vmatmul.f32.gmra.mxu3 %v419_v8 }
 0x2fd   : > { %1340 = vmatpush.msrb.mxu3 %v2546_v3  ;;  %1325 = vmatpush.msra.mxu2 %v2398_v55  ;;  %v2829_v55 = vld [vmem:[#allocation32_spill] sm:$0xff] }
 0x2ff   : > { %1341 = vmatpush.msrb.mxu3 %v2535_v30  ;;  %1326 = vmatpush.msra.mxu2 %v2392_v35  ;;  %v2831_v35 = vld [vmem:[#allocation30_spill] sm:$0xff]  ;;  %v2833_v30 = vld [vmem:[#allocation15_spill] sm:$0xff] }
 0x301   : > { %1342 = vmatpush.msrb.mxu3 %v2529_v2  ;;  %1327 = vmatpush.msra.mxu2 %v2826_v31  ;;  %v2832_v2 = vld [vmem:[#allocation18_spill] sm:$0xff] }
 0x303   : > { %1343 = vmatpush.msrb.mxu3 %v2524_v10  ;;  %1328 = vmatpush.msra.mxu2 %v2827_v29  ;;  %v1220_v10 = vrot.slane %v1219_v14, 4 }
 0x304   : > { %1329 = vmatmul.f32.vlgmr.msra.gmra.mxu2 %v393_v26 }
 0x305   : > { %1344 = vmatpush.msrb.mxu3 %v2511_v5  ;;  %v1221_v3 = vadd.f32 %v1220_v10, %v1219_v14 }
 0x307   : > { %1345 = vmatpush.msrb.mxu3 %v2506_v28  ;;  %v1222_v5 = vrot.slane %v1221_v3, 2 }
 0x309   : > { %1346 = vmatpush.msrb.mxu3 %v2828_v6  ;;  %v1223_v56 = vadd.f32 %v1222_v5, %v1221_v3 }
 0x30b   : > { %1347 = vmatpush.msrb.mxu3 %v2829_v55  ;;  %v1224_v28 = vrot.slane %v1223_v56, 1 }
 0x30c   : > { %1332 = vmatmul.f32.gmra.mxu2 %v396_v57 }
 0x30d   : > { %1348 = vmatpush.msrb.mxu3 %v2830_v52  ;;  %v1225_v49 = vadd.f32 %v1224_v28, %v1223_v56 }
 0x30f   : > { %1349 = vmatpush.msrb.mxu3 %v2831_v35  ;;  %1803 = vrcp.f32 %v1225_v49 }
 0x310   : > { %1805 = vrcp.f32 %v1262_v12 }
 0x311   : > { %1350 = vmatpush.msrb.mxu3 %v2832_v2 }
 0x313   : > { %1351 = vmatpush.msrb.mxu3 %v2833_v30 }
 0x314   : > { %1352 = vmatmul.f32.vlgmr.msrb.gmra.mxu3 %v416_v25 }
 0x315   : > { %v1804_v20 = vpop.eup %1803 }
 0x316   : > { %v1806_v26 = vpop.eup %1805 }
 0x31c   : > { %1355 = vmatmul.f32.gmra.mxu3 %v419_v8 }
 0x356   : > { %v1374_v39 = vpop.permute.xlu0 %1373 }
 0x360   : > { %v1379_v18 = vpop.permute.xlu1 %1378 }
 0x367   : > { %v1284_v13 = vpop.f32.mrf.mxu2 }
 0x36f   : > { %v1287_v37 = vpop.f32.mrf.mxu2 }
 0x377   : > { %v1307_v53 = vpop.f32.mrf.mxu3 }
 0x378   : > { %v1308_v47 = vadd.f32 %v1307_v53, %v1284_v13 }
 0x37a   : > { %v1361_v60 = vmul.f32 %v1804_v20, %v1308_v47 }
 0x37c   : > { %v1365_v40 = vmax.f32 %v1361_v60, 0.0 }
 0x37e   : > { %v1381_v43 = vmul.f32 %v1374_v39, %v1365_v40 }
 0x37f   : > { %v1310_v61 = vpop.f32.mrf.mxu3 }
 0x380   : > { %v1397_v51 = vadd.f32 %v1390_v48, %v1381_v43  ;;  %v1311_v58 = vadd.f32 %v1310_v61, %v1287_v37 }
 0x382   : > { %1401 = vst [vmem:[%s2700_s19] sm:$0xff] %v1397_v51  ;;  %v1363_v9 = vmul.f32 %v1804_v20, %v1311_v58 }
 0x384   : > { %v1367_v54 = vmax.f32 %v1363_v9, 0.0 }
 0x386   : > { %v1383_v38 = vmul.f32 %v1379_v18, %v1367_v54 }
 0x387   : > { %v1330_v41 = vpop.f32.mrf.mxu2 }
 0x388   : > { %v1399_v15 = vadd.f32 %v1395_v34, %v1383_v38 }
 0x38a   : > { %1403 = vst [vmem:[%s2700_s19 + $0x10] sm:$0xff] %v1399_v15 }
 0x38f   : > { %v1333_v16 = vpop.f32.mrf.mxu2 }
 0x397   : > { %v1353_v17 = vpop.f32.mrf.mxu3 }
 0x398   : > { %v1354_v21 = vadd.f32 %v1353_v17, %v1330_v41 }
 0x39a   : > { %v1362_v62 = vmul.f32 %v1806_v26, %v1354_v21 }
 0x39c   : > { %v1366_v59 = vmax.f32 %v1362_v62, 0.0 }
 0x39e   : > { %v1382_v24 = vmul.f32 %v1374_v39, %v1366_v59 }
 0x39f   : > { %v1356_v42 = vpop.f32.mrf.mxu3 }
 0x3a0   : > { %v1398_v1 = vadd.f32 %v1390_v48, %v1382_v24  ;;  %v1357_v7 = vadd.f32 %v1356_v42, %v1333_v16 }
 0x3a2   : > { %1402 = vst [vmem:[%s2700_s19 + $0x8] sm:$0xff] %v1398_v1  ;;  %v1364_v57 = vmul.f32 %v1806_v26, %v1357_v7 }
 0x3a4   : > { %v1368_v46 = vmax.f32 %v1364_v57, 0.0 }
 0x3a6   : > { %v1384_v0 = vmul.f32 %v1379_v18, %v1368_v46 }
 0x3a8   : > { %v1400_v44 = vadd.f32 %v1395_v34, %v1384_v0 }
 0x3aa   : > { %1404 = vst [vmem:[%s2700_s19 + $0x18] sm:$0xff] %v1400_v44 }
 0x3ab   : > { %1864 = shalt.err (!%p1861_p13)
}
 0x3ac   : > { %s1924_s28 = smov 256   ;;  %s1925_s19 = smov 16  }
 0x3ad   : > { %1606 = dma.vmem_to_hbm [thread:$0]  (%p2017_p9), %s1421_s20, 512, %s1423_s21, %s1406_s13, %s1924_s28, %s1924_s28, %s1925_s19  }
 0x3ae PF: > { %s1437_s18 = sand.u32 1, %s1899_s24   ;;  %p1613_p0 = pnand %p1512_p12, %p2024_p11 }
 0x3af   : > { %s1438_s11 = scalar_lea.sflag [#allocation5], %s1437_s18 }
 0x3b0   : > { %p1614_p1 = pneg %p1613_p0 }
 0x3b2   : > { %1894 = dma.done.wait (%p1614_p1), %s1438_s11, 512  }
 0x3b3   : > { %1896 = vsyncadd (%p1614_p1), %s1438_s11, 4294966784  ;;  %s23_s29 = sadd.s32 1, %s1919_s29   ;;  %s2835_s27 = sld [smem:[#allocation9_spill]] }
 0x3b4   : > { %p20_p2 = scmp.ge.s32.totalorder %s23_s29, 4   ;;  %s2836_s28 = sld [smem:[#allocation10_spill]] }
 0x3b5   : > { %s2837_s24 = smov %s1903_s25  ;;  %s2838_s25 = smov %s1907_s26 }
 0x3b6   : > { %s2839_s26 = smov %s2022_s15  ;;  %22 = sbr.rel (!%p20_p2) target bundleno = 6 (0x6), region = 98 }
 0x3bb   :  { %1444 = vsyncpa [#allocation4], 1 }
 0x3bc   :  { %1446 = vsyncpa [#allocation4 + $0x1], 1 }
 0x3bd   :  { %1447 = vsyncpa [#allocation5], 1 }
 0x3be   :  { %1449 = vsyncpa [#allocation5 + $0x1], 1 }

</bundles_post_ra>
